<compile_context>
chip_gen: v6e
topology: v6e:2x2x1
jax: 0.10.0
libtpu: 0.0.40
codegen_flags: <defaults>
</compile_context>

<pallas_src>
import functools

import jax
import jax.numpy as jnp
from jax.experimental import pallas as pl
from jax.experimental.pallas import tpu as pltpu


def _gcn_fused_kernel(a_ref, x_ref, w_ref, b_ref, o_ref, h_ref, *, tm,
                      num_classes):
    l = pl.program_id(0)                       # layer index (sequential)
    last_layer = pl.num_programs(0) - 1
    n_pad = a_ref.shape[0]
    n_tiles = n_pad // tm                      # static python int

    # Layer 0: seed ping-pong slot 0 of the resident activations with X.
    @pl.when(l == 0)
    def _():
        h_ref[0:n_pad, :] = x_ref[...]

    parity = l % 2
    src = pl.multiple_of(parity * n_pad, tm)         # read slot base row
    dst = pl.multiple_of((1 - parity) * n_pad, tm)   # write slot base row

    h_prev = h_ref[pl.ds(src, n_pad), :]       # (n_pad, F) bf16, prev-layer H
    w = w_ref[...]                             # (F, F) bf16
    b = b_ref[...]                             # (1, F) f32

    def tile_body(t, carry):
        row0 = pl.multiple_of(t * tm, tm)
        # Reassociated propagation: (Â[tile,:] @ H_prev) @ W + b, all MXU
        # matmuls bf16 x bf16 -> f32 accumulation.
        ah = jnp.dot(a_ref[pl.ds(row0, tm), :], h_prev,
                     preferred_element_type=jnp.float32).astype(jnp.bfloat16)
        z = jnp.dot(ah, w, preferred_element_type=jnp.float32) + b

        @pl.when(l != last_layer)
        def _():
            # ReLU; F.dropout(x, training=self.training) is identity in eval
            # mode (training-mode dropout intentionally not emulated).
            h_ref[pl.ds(pl.multiple_of(dst + row0, tm), tm), :] = (
                jnp.maximum(z, 0.0).astype(jnp.bfloat16))

        @pl.when(l == last_layer)
        def _():
            # log_softmax over the zero-padded class lanes (mask pad to -inf).
            lane = jax.lax.broadcasted_iota(jnp.int32, z.shape, 1)
            logits = jnp.where(lane < num_classes, z, -jnp.inf)
            m = jnp.max(logits, axis=-1, keepdims=True)
            s = logits - m
            lse = jnp.log(jnp.sum(jnp.exp(s), axis=-1, keepdims=True))
            o_ref[pl.ds(row0, tm), :] = s - lse

        return carry

    jax.lax.fori_loop(0, n_tiles, tile_body, 0, unroll=True)


def gcn_forward(a_pad, x_pad, w_stack, b_stack, *, num_nodes, num_classes,
                tm=128):
    """Fused 6-layer GCN forward. Inputs padded to 128-lane feature dim."""
    n_pad = a_pad.shape[0]
    f_pad = w_stack.shape[-1]
    n_layers = w_stack.shape[0]
    assert n_pad % tm == 0 and f_pad % 128 == 0

    kernel = functools.partial(_gcn_fused_kernel, tm=tm,
                               num_classes=num_classes)

    flops = n_layers * (2 * n_pad * n_pad * f_pad     # Â @ H per layer
                        + 2 * n_pad * f_pad * f_pad)  # (ÂH) @ W per layer
    bytes_accessed = (a_pad.size * a_pad.dtype.itemsize
                      + x_pad.size * x_pad.dtype.itemsize
                      + w_stack.size * w_stack.dtype.itemsize
                      + b_stack.size * b_stack.dtype.itemsize
                      + n_pad * f_pad * 4)            # output written once

    # Explicit VMEM budget: Â + X (one copy each, untiled), ping-pong H,
    # double-buffered per-layer W/b blocks, f32 output block, plus headroom
    # for matmul temporaries / spills.
    resident_bytes = (a_pad.size * a_pad.dtype.itemsize
                      + x_pad.size * x_pad.dtype.itemsize
                      + 2 * n_pad * f_pad * 2                     # H ping-pong
                      + 2 * (f_pad * f_pad * 2 + 8 * f_pad * 4)   # W/b blocks
                      + 2 * n_pad * f_pad * 4)                    # output
    vmem_limit = int(min(2 * resident_bytes + (8 << 20), 100 << 20))

    out = pl.pallas_call(
        kernel,
        out_shape=jax.ShapeDtypeStruct((n_pad, f_pad), jnp.float32),
        grid_spec=pltpu.PrefetchScalarGridSpec(
            num_scalar_prefetch=0,
            grid=(n_layers,),
            in_specs=[
                # Â and X: untiled, VMEM-resident for the whole kernel
                # (single copy -- no pipeline double-buffering).
                pl.BlockSpec(memory_space=pltpu.MemorySpace.VMEM),
                pl.BlockSpec(memory_space=pltpu.MemorySpace.VMEM),
                # Per-layer weight / bias: small pipelined blocks, so layer
                # l+1's weights prefetch while layer l computes.
                pl.BlockSpec((None, f_pad, f_pad), lambda l: (l, 0, 0)),
                pl.BlockSpec((None, 1, f_pad), lambda l: (l, 0, 0)),
            ],
            # Constant block index + written only on the final layer
            # => exactly one HBM writeback of the output.
            out_specs=pl.BlockSpec((n_pad, f_pad), lambda l: (0, 0)),
            scratch_shapes=[
                # Ping-pong node activations: rows [0, n_pad) = slot 0,
                # rows [n_pad, 2*n_pad) = slot 1.
                pltpu.VMEM((2 * n_pad, f_pad), jnp.bfloat16),
            ],
        ),
        compiler_params=pltpu.CompilerParams(
            # Layers are inherently sequential.
            dimension_semantics=("arbitrary",),
            vmem_limit_bytes=vmem_limit,
        ),
        cost_estimate=pl.CostEstimate(
            flops=int(flops),
            transcendentals=int(n_pad * f_pad),
            bytes_accessed=int(bytes_accessed),
        ),
    )(a_pad, x_pad, w_stack, b_stack)
    # Strip node-row and class-lane padding.
    return out[:num_nodes, :num_classes]


def build_normalized_adjacency(edge_index, num_nodes):
    """Â = D̃^{-1/2} (A + I) D̃^{-1/2}  (GCNConv normalization, unit weights).

    Note: duplicate edges collapse to weight 1 and pre-existing self-loops
    would get weight 2 after adding I — minor deviations from PyG's gcn_norm,
    irrelevant for this synthetic graph.
    """
    src, dst = edge_index
    a = jnp.zeros((num_nodes, num_nodes), jnp.float32).at[src, dst].set(1.0)
    a = jnp.maximum(a, a.T)                              # undirected edges
    a = a + jnp.eye(num_nodes, dtype=jnp.float32)        # add self-loops
    deg = a.sum(axis=1)
    d_inv_sqrt = jnp.where(deg > 0, 1.0 / jnp.sqrt(deg), 0.0)
    return a * d_inv_sqrt[:, None] * d_inv_sqrt[None, :]


if __name__ == "__main__":
    # Small synthetic "Cora-like" graph (real Cora: 2708 nodes, 1433 features,
    # 7 classes); same forward structure: F_in -> 16 x5 -> 7.
    num_nodes = 200
    num_node_features = 48
    hidden_features = 16
    num_classes = 7
    num_edges = 800
    n_layers = 6

    TM = 128                        # in-kernel node-row chunk
    F_PAD = 128                     # lane-dense (padded) feature width
    n_pad = ((num_nodes + TM - 1) // TM) * TM   # 256 (multiple of 128)

    key = jax.random.PRNGKey(0)
    keys = jax.random.split(key, 2 + 2 * n_layers)
    k_feat, k_edge = keys[0], keys[1]
    w_keys = keys[2:2 + n_layers]
    b_keys = keys[2 + n_layers:]

    x = jax.random.normal(k_feat, (num_nodes, num_node_features), jnp.float32)
    edge_index = jax.random.randint(k_edge, (2, num_edges), 0, num_nodes)
    a_hat = build_normalized_adjacency(edge_index, num_nodes)

    dims = [num_node_features] + [hidden_features] * 5 + [num_classes]
    ws, bs = [], []
    for li in range(n_layers):
        fan_in, fan_out = dims[li], dims[li + 1]
        limit = (6.0 / (fan_in + fan_out)) ** 0.5
        w = jax.random.uniform(w_keys[li], (fan_in, fan_out), jnp.float32,
                               minval=-limit, maxval=limit)
        b = 0.1 * jax.random.normal(b_keys[li], (fan_out,), jnp.float32)
        ws.append(w)
        bs.append(b)

    # Pad + cast the VMEM-resident streams to bf16; pad features to 128 lanes.
    a_pad = (jnp.zeros((n_pad, n_pad), jnp.float32)
             .at[:num_nodes, :num_nodes].set(a_hat).astype(jnp.bfloat16))
    x_pad = (jnp.zeros((n_pad, F_PAD), jnp.float32)
             .at[:num_nodes, :num_node_features].set(x).astype(jnp.bfloat16))
    w_stack = jnp.stack([
        jnp.zeros((F_PAD, F_PAD), jnp.float32)
        .at[:w.shape[0], :w.shape[1]].set(w) for w in ws
    ]).astype(jnp.bfloat16)                                 # (L, 128, 128)
    b_stack = jnp.stack([
        jnp.zeros((1, F_PAD), jnp.float32).at[0, :b.shape[0]].set(b)
        for b in bs
    ])                                                      # (L, 1, 128) f32

    out = jax.block_until_ready(
        gcn_forward(a_pad, x_pad, w_stack, b_stack,
                    num_nodes=num_nodes, num_classes=num_classes, tm=TM))

    # Pure-JAX reference mirroring the kernel's reassociated bf16-storage /
    # f32-accumulate numerics (unpadded shapes).
    a_ref = a_pad[:num_nodes, :num_nodes]                   # bf16
    h = x_pad[:num_nodes, :num_node_features]               # bf16
    ref = None
    for li in range(n_layers):
        w_bf = w_stack[li, :dims[li], :dims[li + 1]]        # bf16
        b_f = b_stack[li, 0, :dims[li + 1]]                 # f32
        ah = jnp.dot(a_ref, h,
                     preferred_element_type=jnp.float32).astype(jnp.bfloat16)
        z = jnp.dot(ah, w_bf, preferred_element_type=jnp.float32) + b_f
        if li < n_layers - 1:
            h = jnp.maximum(z, 0.0).astype(jnp.bfloat16)
        else:
            ref = jax.nn.log_softmax(z, axis=-1)

    assert out.shape == (num_nodes, num_classes)
    max_err = float(jnp.max(jnp.abs(out - ref)))
    assert jnp.allclose(out, ref, atol=1e-2, rtol=1e-2), max_err
    print("KERNEL_OK")
</pallas_src>

<mosaic_0001>
module attributes {stable_mosaic.version = 11 : i64} {
  func.func @_gcn_fused_kernel(%arg0: i32, %arg1: memref<256x256xbf16, #tpu.memory_space<vmem>>, %arg2: memref<256x128xbf16, #tpu.memory_space<vmem>>, %arg3: memref<1x128x128xbf16, #tpu.memory_space<vmem>>, %arg4: memref<1x1x128xf32, #tpu.memory_space<vmem>>, %arg5: memref<256x128xf32, #tpu.memory_space<vmem>>, %arg6: memref<512x128xbf16, #tpu.memory_space<vmem>>) attributes {dimension_semantics = [#tpu.dimension_semantics<arbitrary>], iteration_bounds = array<i64: 6>, scalar_prefetch = 0 : i64, scratch_operands = 1 : i64, tpu.core_type = #tpu.core_type<tc>, window_params = [{pipeline_mode = #tpu.pipeline_mode<synchronous>, transform_indices = @transform_0, window_bounds = array<i64: 256, 256>}, {pipeline_mode = #tpu.pipeline_mode<synchronous>, transform_indices = @transform_1, window_bounds = array<i64: 256, 128>}, {transform_indices = @transform_2, window_bounds = array<i64: 1, 128, 128>}, {transform_indices = @transform_3, window_bounds = array<i64: 1, 1, 128>}, {pipeline_mode = #tpu.pipeline_mode<synchronous>, transform_indices = @transform_4, window_bounds = array<i64: 256, 128>}]} {
    %c0_i32 = arith.constant 0 : i32
    %0 = arith.cmpi eq, %arg0, %c0_i32 : i32
    %1 = arith.extui %0 : i1 to i32
    %c0_i32_0 = arith.constant 0 : i32
    %2 = arith.cmpi ne, %1, %c0_i32_0 : i32
    scf.if %2 {
      %c0_29 = arith.constant 0 : index
      %c0_30 = arith.constant 0 : index
      %54 = vector.load %arg2[%c0_29, %c0_30] : memref<256x128xbf16, #tpu.memory_space<vmem>>, vector<256x128xbf16>
      %c0_31 = arith.constant 0 : index
      %c0_32 = arith.constant 0 : index
      %55 = vector.load %arg6[%c0_31, %c0_32] : memref<512x128xbf16, #tpu.memory_space<vmem>>, vector<256x128xbf16>
      tpu.vector_store %arg6[%c0_31, %c0_32], %54 {strides = array<i32>} : memref<512x128xbf16, #tpu.memory_space<vmem>>, vector<256x128xbf16>,
    } else {
    }
    %c2_i32 = arith.constant 2 : i32
    %c0_i32_1 = arith.constant 0 : i32
    %3 = arith.cmpi eq, %c2_i32, %c0_i32_1 : i32
    %c1_i32 = arith.constant 1 : i32
    %4 = arith.select %3, %c1_i32, %c2_i32 : i32
    %5 = arith.remsi %arg0, %4 : i32
    %c0_i32_2 = arith.constant 0 : i32
    %6 = arith.cmpi ne, %5, %c0_i32_2 : i32
    %c0_i32_3 = arith.constant 0 : i32
    %7 = arith.cmpi slt, %5, %c0_i32_3 : i32
    %c0_i32_4 = arith.constant 0 : i32
    %8 = arith.cmpi slt, %4, %c0_i32_4 : i32
    %9 = arith.xori %7, %8 : i1
    %10 = arith.andi %9, %6 : i1
    %11 = arith.addi %5, %4 : i32
    %12 = arith.select %10, %11, %5 : i32
    %c256_i32 = arith.constant 256 : i32
    %13 = arith.muli %12, %c256_i32 : i32
    %14 = tpu.assume_multiple %13, 128 : i32
    %c1_i32_5 = arith.constant 1 : i32
    %15 = arith.subi %c1_i32_5, %12 : i32
    %c256_i32_6 = arith.constant 256 : i32
    %16 = arith.muli %15, %c256_i32_6 : i32
    %17 = tpu.assume_multiple %16, 128 : i32
    %18 = arith.index_cast %14 : i32 to index
    %c0 = arith.constant 0 : index
    %19 = vector.load %arg6[%18, %c0] : memref<512x128xbf16, #tpu.memory_space<vmem>>, vector<256x128xbf16>
    %c0_7 = arith.constant 0 : index
    %c0_8 = arith.constant 0 : index
    %c0_9 = arith.constant 0 : index
    %20 = vector.load %arg3[%c0_7, %c0_8, %c0_9] : memref<1x128x128xbf16, #tpu.memory_space<vmem>>, vector<1x128x128xbf16>
    %21 = vector.shape_cast %20 : vector<1x128x128xbf16> to vector<128x128xbf16>
    %c0_10 = arith.constant 0 : index
    %c0_11 = arith.constant 0 : index
    %c0_12 = arith.constant 0 : index
    %22 = vector.load %arg4[%c0_10, %c0_11, %c0_12] : memref<1x1x128xf32, #tpu.memory_space<vmem>>, vector<1x1x128xf32>
    %23 = vector.shape_cast %22 : vector<1x1x128xf32> to vector<1x128xf32>
    %c0_i32_13 = arith.constant 0 : i32
    %c128_i32 = arith.constant 128 : i32
    %24 = arith.muli %c0_i32_13, %c128_i32 : i32
    %25 = tpu.assume_multiple %24, 128 : i32
    %26 = arith.index_cast %25 : i32 to index
    %c0_14 = arith.constant 0 : index
    %27 = vector.load %arg1[%26, %c0_14] : memref<256x256xbf16, #tpu.memory_space<vmem>>, vector<128x256xbf16>
    %cst = arith.constant dense<0.000000e+00> : vector<128x128xf32>
    %28 = tpu.matmul %27, %19, %cst {dimension_numbers = #tpu.dot_dimension_numbers<[1], [0], [0], [1], [0, 0, 1, 1], [], []>} : vector<128x256xbf16>, vector<256x128xbf16>, vector<128x128xf32> -> vector<128x128xf32>
    %29 = arith.truncf %28 : vector<128x128xf32> to vector<128x128xbf16>
    %cst_15 = arith.constant dense<0.000000e+00> : vector<128x128xf32>
    %30 = tpu.matmul %29, %21, %cst_15 {dimension_numbers = #tpu.dot_dimension_numbers<[1], [0], [0], [1], [0, 0, 1, 1], [], []>} : vector<128x128xbf16>, vector<128x128xbf16>, vector<128x128xf32> -> vector<128x128xf32>
    %31 = vector.broadcast %23 : vector<1x128xf32> to vector<128x128xf32>
    %32 = arith.addf %30, %31 : vector<128x128xf32>
    %c5_i32 = arith.constant 5 : i32
    %33 = arith.cmpi ne, %arg0, %c5_i32 : i32
    %34 = arith.extui %33 : i1 to i32
    %c0_i32_16 = arith.constant 0 : i32
    %35 = arith.cmpi ne, %34, %c0_i32_16 : i32
    scf.if %35 {
      %cst_29 = arith.constant 0.000000e+00 : f32
      %54 = vector.broadcast %cst_29 : f32 to vector<128x128xf32>
      %55 = arith.maximumf %32, %54 : vector<128x128xf32>
      %56 = arith.truncf %55 : vector<128x128xf32> to vector<128x128xbf16>
      %57 = arith.addi %17, %25 : i32
      %58 = tpu.assume_multiple %57, 128 : i32
      %59 = arith.index_cast %58 : i32 to index
      %c0_30 = arith.constant 0 : index
      %60 = vector.load %arg6[%59, %c0_30] : memref<512x128xbf16, #tpu.memory_space<vmem>>, vector<128x128xbf16>
      tpu.vector_store %arg6[%59, %c0_30], %56 {strides = array<i32>} : memref<512x128xbf16, #tpu.memory_space<vmem>>, vector<128x128xbf16>,
    } else {
    }
    %c5_i32_17 = arith.constant 5 : i32
    %36 = arith.cmpi eq, %arg0, %c5_i32_17 : i32
    %37 = arith.extui %36 : i1 to i32
    %c0_i32_18 = arith.constant 0 : i32
    %38 = arith.cmpi ne, %37, %c0_i32_18 : i32
    scf.if %38 {
      %54 = tpu.iota {dimensions = array<i32: 1>} : vector<128x128xi32>
      %c7_i32 = arith.constant 7 : i32
      %55 = vector.broadcast %c7_i32 : i32 to vector<128x128xi32>
      %56 = arith.cmpi slt, %54, %55 : vector<128x128xi32>
      %cst_29 = arith.constant 0xFF800000 : f32
      %57 = vector.broadcast %cst_29 : f32 to vector<128x128xf32>
      %58 = arith.select %56, %32, %57 : vector<128x128xi1>, vector<128x128xf32>
      %cst_30 = arith.constant dense<0xFF800000> : vector<128xf32>
      %59 = vector.multi_reduction <maximumf>, %58, %cst_30 [1] : vector<128x128xf32> to vector<128xf32>
      %60 = vector.shape_cast %59 : vector<128xf32> to vector<128x1xf32>
      %61 = vector.broadcast %60 : vector<128x1xf32> to vector<128x128xf32>
      %62 = arith.subf %58, %61 : vector<128x128xf32>
      %63 = math.exp %62 : vector<128x128xf32>
      %cst_31 = arith.constant dense<0.000000e+00> : vector<128xf32>
      %64 = vector.multi_reduction <add>, %63, %cst_31 [1] : vector<128x128xf32> to vector<128xf32>
      %65 = vector.shape_cast %64 : vector<128xf32> to vector<128x1xf32>
      %66 = math.log %65 : vector<128x1xf32>
      %67 = vector.broadcast %66 : vector<128x1xf32> to vector<128x128xf32>
      %68 = arith.subf %62, %67 : vector<128x128xf32>
      %69 = arith.index_cast %25 : i32 to index
      %c0_32 = arith.constant 0 : index
      %70 = vector.load %arg5[%69, %c0_32] : memref<256x128xf32, #tpu.memory_space<vmem>>, vector<128x128xf32>
      tpu.vector_store %arg5[%69, %c0_32], %68 {strides = array<i32>} : memref<256x128xf32, #tpu.memory_space<vmem>>, vector<128x128xf32>,
    } else {
    }
    %c1_i32_19 = arith.constant 1 : i32
    %c128_i32_20 = arith.constant 128 : i32
    %39 = arith.muli %c1_i32_19, %c128_i32_20 : i32
    %40 = tpu.assume_multiple %39, 128 : i32
    %41 = arith.index_cast %40 : i32 to index
    %c0_21 = arith.constant 0 : index
    %42 = vector.load %arg1[%41, %c0_21] : memref<256x256xbf16, #tpu.memory_space<vmem>>, vector<128x256xbf16>
    %cst_22 = arith.constant dense<0.000000e+00> : vector<128x128xf32>
    %43 = tpu.matmul %42, %19, %cst_22 {dimension_numbers = #tpu.dot_dimension_numbers<[1], [0], [0], [1], [0, 0, 1, 1], [], []>} : vector<128x256xbf16>, vector<256x128xbf16>, vector<128x128xf32> -> vector<128x128xf32>
    %44 = arith.truncf %43 : vector<128x128xf32> to vector<128x128xbf16>
    %cst_23 = arith.constant dense<0.000000e+00> : vector<128x128xf32>
    %45 = tpu.matmul %44, %21, %cst_23 {dimension_numbers = #tpu.dot_dimension_numbers<[1], [0], [0], [1], [0, 0, 1, 1], [], []>} : vector<128x128xbf16>, vector<128x128xbf16>, vector<128x128xf32> -> vector<128x128xf32>
    %46 = vector.broadcast %23 : vector<1x128xf32> to vector<128x128xf32>
    %47 = arith.addf %45, %46 : vector<128x128xf32>
    %c5_i32_24 = arith.constant 5 : i32
    %48 = arith.cmpi ne, %arg0, %c5_i32_24 : i32
    %49 = arith.extui %48 : i1 to i32
    %c0_i32_25 = arith.constant 0 : i32
    %50 = arith.cmpi ne, %49, %c0_i32_25 : i32
    scf.if %50 {
      %cst_29 = arith.constant 0.000000e+00 : f32
      %54 = vector.broadcast %cst_29 : f32 to vector<128x128xf32>
      %55 = arith.maximumf %47, %54 : vector<128x128xf32>
      %56 = arith.truncf %55 : vector<128x128xf32> to vector<128x128xbf16>
      %57 = arith.addi %17, %40 : i32
      %58 = tpu.assume_multiple %57, 128 : i32
      %59 = arith.index_cast %58 : i32 to index
      %c0_30 = arith.constant 0 : index
      %60 = vector.load %arg6[%59, %c0_30] : memref<512x128xbf16, #tpu.memory_space<vmem>>, vector<128x128xbf16>
      tpu.vector_store %arg6[%59, %c0_30], %56 {strides = array<i32>} : memref<512x128xbf16, #tpu.memory_space<vmem>>, vector<128x128xbf16>,
    } else {
    }
    %c5_i32_26 = arith.constant 5 : i32
    %51 = arith.cmpi eq, %arg0, %c5_i32_26 : i32
    %52 = arith.extui %51 : i1 to i32
    %c0_i32_27 = arith.constant 0 : i32
    %53 = arith.cmpi ne, %52, %c0_i32_27 : i32
    scf.if %53 {
      %54 = tpu.iota {dimensions = array<i32: 1>} : vector<128x128xi32>
      %c7_i32 = arith.constant 7 : i32
      %55 = vector.broadcast %c7_i32 : i32 to vector<128x128xi32>
      %56 = arith.cmpi slt, %54, %55 : vector<128x128xi32>
      %cst_29 = arith.constant 0xFF800000 : f32
      %57 = vector.broadcast %cst_29 : f32 to vector<128x128xf32>
      %58 = arith.select %56, %47, %57 : vector<128x128xi1>, vector<128x128xf32>
      %cst_30 = arith.constant dense<0xFF800000> : vector<128xf32>
      %59 = vector.multi_reduction <maximumf>, %58, %cst_30 [1] : vector<128x128xf32> to vector<128xf32>
      %60 = vector.shape_cast %59 : vector<128xf32> to vector<128x1xf32>
      %61 = vector.broadcast %60 : vector<128x1xf32> to vector<128x128xf32>
      %62 = arith.subf %58, %61 : vector<128x128xf32>
      %63 = math.exp %62 : vector<128x128xf32>
      %cst_31 = arith.constant dense<0.000000e+00> : vector<128xf32>
      %64 = vector.multi_reduction <add>, %63, %cst_31 [1] : vector<128x128xf32> to vector<128xf32>
      %65 = vector.shape_cast %64 : vector<128xf32> to vector<128x1xf32>
      %66 = math.log %65 : vector<128x1xf32>
      %67 = vector.broadcast %66 : vector<128x1xf32> to vector<128x128xf32>
      %68 = arith.subf %62, %67 : vector<128x128xf32>
      %69 = arith.index_cast %40 : i32 to index
      %c0_32 = arith.constant 0 : index
      %70 = vector.load %arg5[%69, %c0_32] : memref<256x128xf32, #tpu.memory_space<vmem>>, vector<128x128xf32>
      tpu.vector_store %arg5[%69, %c0_32], %68 {strides = array<i32>} : memref<256x128xf32, #tpu.memory_space<vmem>>, vector<128x128xf32>,
    } else {
    }
    %c2_i32_28 = arith.constant 2 : i32
    return
  }
  func.func @transform_0(%arg0: i32) -> (i32, i32) {
    %c0_i32 = arith.constant 0 : i32
    %c0_i32_0 = arith.constant 0 : i32
    %c0_i32_1 = arith.constant 0 : i32
    return %c0_i32, %c0_i32_0 : i32, i32
  }
  func.func @transform_1(%arg0: i32) -> (i32, i32) {
    %c0_i32 = arith.constant 0 : i32
    %c0_i32_0 = arith.constant 0 : i32
    %c0_i32_1 = arith.constant 0 : i32
    return %c0_i32, %c0_i32_0 : i32, i32
  }
  func.func @transform_2(%arg0: i32) -> (i32, i32, i32) {
    %c0_i32 = arith.constant 0 : i32
    %c0_i32_0 = arith.constant 0 : i32
    %c0_i32_1 = arith.constant 0 : i32
    return %arg0, %c0_i32, %c0_i32_0 : i32, i32, i32
  }
  func.func @transform_3(%arg0: i32) -> (i32, i32, i32) {
    %c0_i32 = arith.constant 0 : i32
    %c0_i32_0 = arith.constant 0 : i32
    %c0_i32_1 = arith.constant 0 : i32
    return %arg0, %c0_i32, %c0_i32_0 : i32, i32, i32
  }
  func.func @transform_4(%arg0: i32) -> (i32, i32) {
    %c0_i32 = arith.constant 0 : i32
    %c0_i32_0 = arith.constant 0 : i32
    %c0_i32_1 = arith.constant 0 : i32
    return %c0_i32, %c0_i32_0 : i32, i32
  }
}

</mosaic_0001>

<bundles_post_ra>
// kernel: tpu_custom_call.1
= control target key start
LH: loop header
LB: loop body
LE: loop exit
PB: predicated region body
PF: predicated region fallthrough
CT: control target
= control target key end

     0   :  { %9 = vsyncpa [#allocation4], 0  ;;  %s3528_s0 = inlined_call_operand.hbm [shape: bf16[256,256], index: 0, kind: input, shape index: {}]   ;;  %s3529_s1 = inlined_call_operand.hbm [shape: bf16[256,128], index: 1, kind: input, shape index: {}]   ;;  %s3530_s2 = inlined_call_operand.hbm [shape: bf16[6,128,128], index: 2, kind: input, shape index: {}]   ;;  %s3531_s3 = inlined_call_operand.hbm [shape: f32[6,1,128], index: 3, kind: input, shape index: {}]   ;;  %s3532_s4 = inlined_call_operand.hbm [shape: f32[256,128], index: 4, kind: output, shape index: {}]  }
   0x1   :  { %10 = vsyncpa [#allocation7], 0 }
   0x2   :  { %11 = vsyncpa [#allocation5], 0  ;;  %s2824_s15 = smov 0   ;;  %s2826_s16 = smov 0  }
   0x3   :  { %s2828_s17 = smov 0   ;;  %s2830_s18 = smov 0  }
   0x4 LB: > { %s2843_s19 = sadd.s32 4294967295, %s2786_s18   ;;  %s2846_s20 = sadd.s32 1, %s2786_s18   ;;  %s2786_s18 = sphi %s2830_s18, %s3553_s18   ;;  %s2782_s17 = sphi %s2828_s17, %s3552_s17   ;;  %s2778_s16 = sphi %s2826_s16, %s3551_s16   ;;  %s2774_s15 = sphi %s2824_s15, %s3550_s15  }
   0x5   : > { %s63_s21 = ssub.s32 %s2786_s18, %s2846_s20  ;;  %s66_s22 = sadd.s32 1, %s2782_s17 }
   0x6   : > { %p64_p0 = scmp.eq.s32.totalorder %s63_s21, 0  ;;  %p73_p1 = scmp.ne.s32.totalorder %s2782_s17, %s2778_s16 }
   0x7   : > { %p74_p2 = scmp.eq.s32.totalorder %s2786_s18, 0  ;;  %p79_p3 = scmp.ne.s32.totalorder %s2778_s16, %s2774_s15 }
   0x8   : > { %s2856_s23 = scalar_select %p64_p0, %s2782_s17, %s66_s22  }
   0x9   : > { %p2858_p4 = por %p74_p2, %p73_p1  ;;  %p3533_p5 = scmp.eq.s32.totalorder %s2843_s19, 0 }
   0xa   : > { %p1861_p6 = scmp.ge.s32.totalorder %s2786_s18, 1  ;;  %p137_p7 = scmp.lt.s32.totalorder %s2786_s18, 7 }
   0xb   : > { %p2867_p8 = por %p3533_p5, %p79_p3  ;;  %s2788_s27 = smov [#allocation3]  }
   0xc   : > { %p2872_p10 = pnand %p1861_p6, %p137_p7  ;;  %s149_s28 = sshll.u32 %s2788_s27, 4  ;;  %s150_s28 = int_to_ptr.vmem [resolvable:$true] %s149_s28 }
   0xd   : > { %s3538_s25 = scalar_select %p2867_p8, 1, 0 }
   0xe   : > { %s3539_s26 = scalar_select %p2872_p10, 1, 0 }
   0xf   : > { %p2346_p11 = pneg %p2872_p10  ;;  %p2362_p13 = scmp.lt.s32.totalorder %s2786_s18, 6 }
  0x10   : > { %s2619_s5 = scalar_lea.vmem %s150_s28, 4096  ;;  %p2627_p7 = scmp.lt.s32.totalorder %s150_s28, %s150_s28 }
  0x11   : > { %p2880_p12 = pnand %p2346_p11, %p3533_p5  ;;  %p2887_p0 = pnand %p2362_p13, %p2858_p4 }
  0x12   : > { %p2620_p2 = scmp.ne.s32.totalorder %s150_s28, %s2619_s5  ;;  %p2628_p11 = scmp.lt.s32.totalorder %s2619_s5, %s2619_s5 }
  0x13   : > { %p3534_p1 = pneg %p2880_p12 }
  0x14   : > { %p2629_p9 = por %p2628_p11, %p2627_p7 }
  0x15   : > { %p2622_p3 = pnand %p2620_p2, %p3534_p1 }
  0x17   : > { %p2623_p6 = pneg %p2622_p3 }
  0x19   : > { %p2630_p5 = pnand %p2629_p9, %p2623_p6 }
  0x1b   : > { %2633 = shalt.err (!%p2630_p5)
}
  0x1c   : > { %s2789_s6 = smov 128   ;;  %s2790_s7 = smov 8  }
  0x1d   : > { %2349 = dma.hbm_to_vmem [thread:$0]  (!%p2880_p12), %s3528_s0, 4096, %s150_s28, [#allocation4], %s2789_s6, %s2789_s6, %s2790_s7  }
  0x1e   : > { %s176_s10 = sand.u32 1, %s2786_s18   ;;  %s178_s11 = sand.u32 1, %s2782_s17  }
  0x1f   : > { %s1865_s12 = sshll.u32 %s178_s11, 6  ;;  %s1979_s13 = sshll.u32 %s2786_s18, 10 }
  0x20   : > { %s2909_s21 = scalar_lea.hbm %s3530_s2, %s1979_s13  ;;  %s180_s22 = scalar_lea.vmem [#allocation8], %s1865_s12 }
  0x21   : > { %s187_s24 = sshll.u32 %s180_s22, 4  ;;  %s2791_s27 = smov [#allocation6]   ;;  %s2911_s24 = int_to_ptr.vmem [resolvable:$true] %s187_s24 }
  0x22   : > { %s2913_s5 = sshll.u32 %s2791_s27, 4  ;;  %s2915_s28 = scalar_lea.sflag [#allocation4], %s176_s10  ;;  %s163_s5 = int_to_ptr.vmem [resolvable:$true] %s2913_s5 }
  0x23   : > { %s2634_s6 = scalar_lea.hbm %s2909_s21, 1024  ;;  %p2636_p5 = pneg %p2887_p0 }
  0x24   : > { %p2635_p4 = scmp.ne.s32.totalorder %s2909_s21, %s2634_s6  ;;  %s2639_s9 = scalar_lea.hbm %s3530_s2, 6144 }
  0x25   : > { %p2640_p2 = scmp.lt.s32.totalorder %s2909_s21, %s3530_s2  ;;  %p2641_p3 = scmp.lt.s32.totalorder %s2639_s9, %s2634_s6 }
  0x26   : > { %p2637_p9 = pnand %p2636_p5, %p2635_p4 }
  0x27   : > { %p2642_p6 = por %p2641_p3, %p2640_p2 }
  0x28   : > { %p2638_p13 = pneg %p2637_p9 }
  0x2a   : > { %p2643_p7 = pnand %p2642_p6, %p2638_p13 }
  0x2c   : > { %2646 = shalt.err (!%p2643_p7)
}
  0x2d   : > { %s2647_s10 = scalar_lea.vmem %s2911_s24, 1024  ;;  %s2792_s14 = smov [#allocation8]  }
  0x2e   : > { %p2648_p11 = scmp.ne.s32.totalorder %s2911_s24, %s2647_s10  ;;  %s2652_s15 = sshll.u32 %s2792_s14, 4  ;;  %s2653_s15 = int_to_ptr.vmem [resolvable:$false] %s2652_s15 }
  0x2f   : > { %s2654_s22 = scalar_lea.vmem %s2653_s15, 2048  ;;  %p2655_p1 = scmp.lt.s32.totalorder %s2911_s24, %s2653_s15 }
  0x30   : > { %p2650_p4 = pnand %p2648_p11, %p2636_p5  ;;  %p2656_p8 = scmp.lt.s32.totalorder %s2654_s22, %s2647_s10 }
  0x32   : > { %p2651_p9 = pneg %p2650_p4  ;;  %p2657_p10 = por %p2656_p8, %p2655_p1 }
  0x34   : > { %p2658_p2 = pnand %p2657_p10, %p2651_p9 }
  0x36   : > { %2661 = shalt.err (!%p2658_p2)
}
  0x37   : > { %s2793_s27 = smov 64   ;;  %s2794_s6 = smov 4  }
  0x38   : > { %2356 = dma.hbm_to_vmem [thread:$0]  (!%p2887_p0), %s2909_s21, 1024, %s2911_s24, %s2915_s28, %s2793_s27, %s2793_s27, %s2794_s6  }
  0x39   : > { %s2673_s7 = scalar_lea.vmem %s163_s5, 2048  ;;  %p3542_p3 = pneg %p2880_p12 }
  0x3a   : > { %p2674_p13 = scmp.ne.s32.totalorder %s163_s5, %s2673_s7  ;;  %p2681_p8 = scmp.lt.s32.totalorder %s163_s5, %s163_s5 }
  0x3b   : > { %p2682_p10 = scmp.lt.s32.totalorder %s2673_s7, %s2673_s7 }
  0x3c   : > { %p2676_p6 = pnand %p2674_p13, %p3542_p3 }
  0x3d   : > { %p2683_p1 = por %p2682_p10, %p2681_p8 }
  0x3e   : > { %p2677_p7 = pneg %p2676_p6 }
  0x40   : > { %p2684_p11 = pnand %p2683_p1, %p2677_p7 }
  0x42   : > { %2687 = shalt.err (!%p2684_p11)
}
  0x43   : > { %2352 = dma.hbm_to_vmem [thread:$0]  (!%p2880_p12), %s3529_s1, 2048, %s163_s5, [#allocation7], %s2793_s27, %s2793_s27, %s2794_s6  }
  0x44   : > { %s1868_s21 = sshll.u32 %s2786_s18, 4  ;;  %s200_s24 = scalar_lea.vmem [#allocation9], %s178_s11 }
  0x45   : > { %s207_s12 = sshll.u32 %s200_s24, 4  ;;  %s205_s14 = scalar_lea.hbm %s3531_s3, %s1868_s21  ;;  %s208_s12 = int_to_ptr.vmem [resolvable:$true] %s207_s12 }
  0x46   : > { %s2688_s15 = scalar_lea.hbm %s205_s14, 16  ;;  %s2693_s7 = scalar_lea.hbm %s3531_s3, 96 }
  0x47   : > { %p2689_p4 = scmp.ne.s32.totalorder %s205_s14, %s2688_s15  ;;  %p2694_p12 = scmp.lt.s32.totalorder %s205_s14, %s3531_s3 }
  0x48   : > { %p2695_p13 = scmp.lt.s32.totalorder %s2693_s7, %s2688_s15 }
  0x49   : > { %p2691_p9 = pnand %p2689_p4, %p2636_p5 }
  0x4a   : > { %p2696_p3 = por %p2695_p13, %p2694_p12 }
  0x4b   : > { %p2692_p2 = pneg %p2691_p9 }
  0x4d   : > { %p2697_p6 = pnand %p2696_p3, %p2692_p2 }
  0x4f   : > { %2700 = shalt.err (!%p2697_p6)
}
  0x50   : > { %s2701_s11 = scalar_lea.vmem %s208_s12, 16  ;;  %s2795_s27 = smov [#allocation9]  }
  0x51   : > { %p2702_p7 = scmp.ne.s32.totalorder %s208_s12, %s2701_s11  ;;  %s2706_s6 = sshll.u32 %s2795_s27, 4  ;;  %s2707_s6 = int_to_ptr.vmem [resolvable:$false] %s2706_s6 }
  0x52   : > { %s2708_s8 = scalar_lea.vmem %s2707_s6, 32  ;;  %p2709_p1 = scmp.lt.s32.totalorder %s208_s12, %s2707_s6 }
  0x53   : > { %p2704_p8 = pnand %p2702_p7, %p2636_p5  ;;  %p2710_p11 = scmp.lt.s32.totalorder %s2708_s8, %s2701_s11 }
  0x55   : > { %p2705_p10 = pneg %p2704_p8  ;;  %p2711_p4 = por %p2710_p11, %p2709_p1 }
  0x57   : > { %p2712_p9 = pnand %p2711_p4, %p2705_p10 }
  0x59   : > { %2715 = shalt.err (!%p2712_p9)
}
  0x5a   : > { %2359 = dma.hbm_to_vmem [thread:$0]  (!%p2887_p0), %s205_s14, 16, %s208_s12, %s2915_s28  }
  0x5b   : > { %p3543_p2 = scmp.ne.s32.totalorder %s3539_s26, 0 }
  0x5c   : > { %p3544_p12 = scmp.eq.s32.totalorder (!%p3543_p2), %s2843_s19, 0 }
  0x5d   : > { %216 = sbr.rel (%p3543_p2) target bundleno = 1869 (0x74d), region = 36 }
  0x62   : > { %2757 = dma.done.wait (%p3544_p12), [#allocation4], 4096   ;;  %p3545_p5 = pmov %p3544_p12 }
  0x64   : > { %2759 = vsyncadd (%p3545_p5), [#allocation4], 4294963200  ;;  %p3546_p13 = pmov %p3545_p5 }
  0x65   : > { %p3547_p3 = pmov %p3545_p5 }
  0x66   : > { %2761 = dma.done.wait (%p3546_p13), [#allocation7], 2048  }
  0x67   : > { %2763 = vsyncadd (%p3547_p3), [#allocation7], 4294965248  ;;  %s226_s30 = sand.u32 1, %s2843_s19   ;;  %s228_s28 = sand.u32 1, %s2778_s16  }
  0x68   : > { %s1872_s9 = sshll.u32 %s228_s28, 6  ;;  %s227_s26 = scalar_lea.sflag [#allocation4], %s226_s30 }
  0x69   : > { %s2984_s21 = scalar_lea.vmem [#allocation8], %s1872_s9  ;;  %p3548_p0 = scmp.ne.s32.totalorder %s3538_s25, 0 }
  0x6b   : > { %2765 = dma.done.wait (%p3548_p0), %s227_s26, 1040  }
  0x6c   : > { %2767 = vsyncadd (%p3548_p0), %s227_s26, 4294966256  ;;  %s2990_s24 = scalar_lea.vmem [#allocation9], %s228_s28  ;;  %p3549_p6 = scmp.ne.s32.totalorder %s2843_s19, 0 }
  0x6e   : > { %266 = sbr.rel (%p3549_p6) target bundleno = 124 (0x7c), region = 56 }
  0x73   : > { %v267_v0 = vld [vmem:[#allocation6] sm:$0xff]   ;;  %v269_v1 = vld [vmem:[#allocation6 + $0x8] sm:$0xff]   ;;  %v271_v2 = vld [vmem:[#allocation6 + $0x10] sm:$0xff]  }
  0x74   : > { %299 = vst [vmem:[#allocation2] sm:$0xff] %v267_v0   ;;  %301 = vst [vmem:[#allocation2 + $0x8] sm:$0xff] %v269_v1   ;;  %v273_v3 = vld [vmem:[#allocation6 + $0x18] sm:$0xff]   ;;  %v275_v4 = vld [vmem:[#allocation6 + $0x20] sm:$0xff]  }
  0x75   : > { %303 = vst [vmem:[#allocation2 + $0x10] sm:$0xff] %v271_v2   ;;  %v277_v5 = vld [vmem:[#allocation6 + $0x28] sm:$0xff]   ;;  %305 = vst [vmem:[#allocation2 + $0x18] sm:$0xff] %v273_v3   ;;  %v279_v6 = vld [vmem:[#allocation6 + $0x30] sm:$0xff]  }
  0x76   : > { %307 = vst [vmem:[#allocation2 + $0x20] sm:$0xff] %v275_v4   ;;  %309 = vst [vmem:[#allocation2 + $0x28] sm:$0xff] %v277_v5   ;;  %v281_v7 = vld [vmem:[#allocation6 + $0x38] sm:$0xff]   ;;  %v283_v8 = vld [vmem:[#allocation6 + $0x40] sm:$0xff]  }
  0x77   : > { %311 = vst [vmem:[#allocation2 + $0x30] sm:$0xff] %v279_v6   ;;  %313 = vst [vmem:[#allocation2 + $0x38] sm:$0xff] %v281_v7   ;;  %v285_v9 = vld [vmem:[#allocation6 + $0x48] sm:$0xff]   ;;  %v287_v10 = vld [vmem:[#allocation6 + $0x50] sm:$0xff]  }
  0x78   : > { %315 = vst [vmem:[#allocation2 + $0x40] sm:$0xff] %v283_v8   ;;  %v289_v11 = vld [vmem:[#allocation6 + $0x58] sm:$0xff]   ;;  %317 = vst [vmem:[#allocation2 + $0x48] sm:$0xff] %v285_v9   ;;  %v291_v12 = vld [vmem:[#allocation6 + $0x60] sm:$0xff]  }
  0x79   : > { %319 = vst [vmem:[#allocation2 + $0x50] sm:$0xff] %v287_v10   ;;  %321 = vst [vmem:[#allocation2 + $0x58] sm:$0xff] %v289_v11   ;;  %v293_v13 = vld [vmem:[#allocation6 + $0x68] sm:$0xff]   ;;  %v295_v14 = vld [vmem:[#allocation6 + $0x70] sm:$0xff]  }
  0x7a   : > { %323 = vst [vmem:[#allocation2 + $0x60] sm:$0xff] %v291_v12   ;;  %325 = vst [vmem:[#allocation2 + $0x68] sm:$0xff] %v293_v13   ;;  %v297_v15 = vld [vmem:[#allocation6 + $0x78] sm:$0xff]  }
  0x7b   : > { %327 = vst [vmem:[#allocation2 + $0x70] sm:$0xff] %v295_v14   ;;  %329 = vst [vmem:[#allocation2 + $0x78] sm:$0xff] %v297_v15  }
  0x7c PF: > { %p331_p7 = scmp.lt.s32.totalorder %s2843_s19, 0  ;;  %s332_s25 = ssub.s32 0, %s2843_s19  ;;  %v2426_v16 = vld [vmem:[#allocation3 + $0x4] ss:$8 sps:$4 sm:$0xff]   ;;  %v2998_v17 = vld [vmem:[%s2984_s21 + $0x38] sm:$0xff]   ;;  %v3004_v18 = vld [vmem:[%s2984_s21 + $0x30] sm:$0xff]  }
  0x7d   : > { %s1874_s12 = smin.u32 %s2843_s19, %s332_s25  ;;  %626 = vmatprep.mubr.bf16.mxu0 %v2426_v16  ;;  %2266 = vmatprep.subr.bf16.mxu1 %v2998_v17  ;;  %v3008_v19 = vld [vmem:[%s2984_s21 + $0x28] sm:$0xff]   ;;  %v3062_v32 = vld [vmem:[%s2984_s21 + $0x20] sm:$0xff]   ;;  %v2427_v38 = vld [vmem:[#allocation3 + $0x14] ss:$8 sps:$4 sm:$0xff]   ;;  %p1921_p10 = scmp.eq.s32.totalorder %s2843_s19, 5 }
  0x7e   : > { %s334_s13 = sand.u32 1, %s1874_s12   ;;  %2267 = vmatpush3.bf16.msra.mxu1 %v2998_v17  ;;  %v2424_v37 = vld [vmem:[#allocation3] ss:$8 sps:$4 sm:$0xff]   ;;  %v2429_v39 = vld [vmem:[#allocation3 + $0x10] ss:$8 sps:$4 sm:$0xff]  }
  0x7f   : > { %s335_s10 = ssub.s32 0, %s334_s13  ;;  %2268 = vmatprep.subr.bf16.mxu1 %v3004_v18  ;;  %v2430_v40 = vld [vmem:[#allocation3 + $0x24] ss:$8 sps:$4 sm:$0xff]   ;;  %v2432_v41 = vld [vmem:[#allocation3 + $0x20] ss:$8 sps:$4 sm:$0xff]   ;;  %v3086_v52 = vld [vmem:[%s2984_s21 + $0x18] sm:$0xff]  }
  0x80   : > { %s3555_s10 = smov (!%p331_p7, %s335_s10), %s334_s13  ;;  %v2433_v42 = vld [vmem:[#allocation3 + $0x34] ss:$8 sps:$4 sm:$0xff]   ;;  %v2435_v43 = vld [vmem:[#allocation3 + $0x30] ss:$8 sps:$4 sm:$0xff]   ;;  %v2436_v44 = vld [vmem:[#allocation3 + $0x44] ss:$8 sps:$4 sm:$0xff]  }
  0x81   : > { %p1876_p8 = scmp.lt.s32.totalorder %s3555_s10, 0  ;;  %s341_s14 = sadd.s32 2, %s3555_s10  ;;  %v2438_v45 = vld [vmem:[#allocation3 + $0x40] ss:$8 sps:$4 sm:$0xff]   ;;  %v2439_v46 = vld [vmem:[#allocation3 + $0x54] ss:$8 sps:$4 sm:$0xff]  }
  0x82   : > { %2269 = vmatpush3.bf16.msra.mxu1 %v3004_v18  ;;  %v2441_v47 = vld [vmem:[#allocation3 + $0x50] ss:$8 sps:$4 sm:$0xff]   ;;  %v2442_v48 = vld [vmem:[#allocation3 + $0x64] ss:$8 sps:$4 sm:$0xff]   ;;  %v2444_v49 = vld [vmem:[#allocation3 + $0x60] ss:$8 sps:$4 sm:$0xff]  }
  0x83   : > { %s3557_s14 = smov (!%p1876_p8, %s341_s14), %s3555_s10  ;;  %2270 = vmatprep.subr.bf16.mxu1 %v3008_v19  ;;  %v2445_v50 = vld [vmem:[#allocation3 + $0x74] ss:$8 sps:$4 sm:$0xff]   ;;  %v2447_v51 = vld [vmem:[#allocation3 + $0x70] ss:$8 sps:$4 sm:$0xff]   ;;  %v3096_v54 = vld [vmem:[%s2984_s21 + $0x8] sm:$0xff]  }
  0x84   : > { %s1877_s15 = sshll.u32 %s3557_s14, 8  ;;  %s344_s29 = ssub.s32 1, %s3557_s14  ;;  %v3091_v53 = vld [vmem:[%s2984_s21 + $0x10] sm:$0xff]   ;;  %v3101_v55 = vld [vmem:[%s2984_s21] sm:$0xff]  }
  0x85   : > { %s3000_s22 = sshll.u32 %s344_s29, 8  ;;  %s346_s7 = sshra.s32 %s1877_s15, 3 }
  0x86   : > { %s1879_s5 = sshll.u32 %s346_s7, 2  ;;  %2271 = vmatpush3.bf16.msra.mxu1 %v3008_v19  ;;  %s935_s11 = sshra.s32 (!%p1921_p10), %s3000_s22, 3 }
  0x87   : > { %s3010_s18 = scalar_lea.vmem [#allocation2], %s1879_s5  ;;  %2272 = vmatprep.subr.bf16.mxu1 %v3062_v32  ;;  %s1938_s27 = sshll.u32 (!%p1921_p10), %s935_s11, 2 }
  0x88   : > { %v3013_v20 = vld [vmem:[%s3010_s18 + $0x78] sm:$0xff]   ;;  %v3021_v22 = vld [vmem:[%s3010_s18 + $0x70] sm:$0xff]   ;;  %v3030_v24 = vld [vmem:[%s3010_s18 + $0x68] sm:$0xff]   ;;  %s938_s6 = scalar_lea.vmem (!%p1921_p10), [#allocation2], %s1938_s27 }
  0x89   : > { %v3017_v21 = vld [vmem:[%s3010_s18 + $0x38] sm:$0xff]   ;;  %2106 = vmatprep.subr.bf16.mxu0 %v3013_v20  ;;  %v3025_v23 = vld [vmem:[%s3010_s18 + $0x30] sm:$0xff]   ;;  %v3035_v25 = vld [vmem:[%s3010_s18 + $0x28] sm:$0xff]  }
  0x8a   : > { %2107 = vmatpush3.bf16.msra.mxu0 %v3017_v21  ;;  %v3040_v26 = vld [vmem:[%s3010_s18 + $0x60] sm:$0xff]   ;;  %v3048_v28 = vld [vmem:[%s3010_s18 + $0x58] sm:$0xff]   ;;  %v3055_v30 = vld [vmem:[%s3010_s18 + $0x50] sm:$0xff]   ;;  %2273 = vmatpush3.bf16.msra.mxu1 %v3062_v32 }
  0x8b   : > { %2108 = vmatprep.subr.bf16.mxu0 %v3021_v22  ;;  %v3044_v27 = vld [vmem:[%s3010_s18 + $0x20] sm:$0xff]   ;;  %v3051_v29 = vld [vmem:[%s3010_s18 + $0x18] sm:$0xff]   ;;  %v3059_v31 = vld [vmem:[%s3010_s18 + $0x10] sm:$0xff]   ;;  %2274 = vmatprep.subr.bf16.mxu1 %v3086_v52 }
  0x8c   : > { %v3068_v33 = vld [vmem:[%s3010_s18 + $0x48] sm:$0xff]   ;;  %v3077_v35 = vld [vmem:[%s3010_s18 + $0x40] sm:$0xff]  }
  0x8d   : > { %v3073_v34 = vld [vmem:[%s3010_s18 + $0x8] sm:$0xff]   ;;  %v3081_v36 = vld [vmem:[%s3010_s18] sm:$0xff]  }
  0x8e   : > { %2109 = vmatpush3.bf16.msra.mxu0 %v3025_v23  ;;  %2275 = vmatpush3.bf16.msra.mxu1 %v3086_v52 }
  0x8f   : > { %2110 = vmatprep.subr.bf16.mxu0 %v3030_v24  ;;  %2276 = vmatprep.subr.bf16.mxu1 %v3091_v53 }
  0x92   : > { %2111 = vmatpush3.bf16.msra.mxu0 %v3035_v25  ;;  %2277 = vmatpush3.bf16.msra.mxu1 %v3091_v53 }
  0x93   : > { %2112 = vmatprep.subr.bf16.mxu0 %v3040_v26  ;;  %2278 = vmatprep.subr.bf16.mxu1 %v3096_v54 }
  0x96   : > { %2113 = vmatpush3.bf16.msra.mxu0 %v3044_v27  ;;  %2279 = vmatpush3.bf16.msra.mxu1 %v3096_v54 }
  0x97   : > { %2114 = vmatprep.subr.bf16.mxu0 %v3048_v28  ;;  %2280 = vmatprep.subr.bf16.mxu1 %v3101_v55 }
  0x9a   : > { %2115 = vmatpush3.bf16.msra.mxu0 %v3051_v29  ;;  %2281 = vmatpush3.bf16.msra.mxu1 %v3101_v55 }
  0x9b   : > { %2116 = vmatprep.subr.bf16.mxu0 %v3055_v30 }
  0x9e   : > { %2117 = vmatpush3.bf16.msra.mxu0 %v3059_v31 }
  0x9f   : > { %2118 = vmatprep.subr.bf16.mxu0 %v3068_v33 }
  0xa2   : > { %2119 = vmatpush3.bf16.msra.mxu0 %v3073_v34 }
  0xa3   : > { %2120 = vmatprep.subr.bf16.mxu0 %v3077_v35 }
  0xa6   : > { %2121 = vmatpush3.bf16.msra.mxu0 %v3081_v36 }
  0xa9   : > { %627 = vmatmul.mubr.bf16.vlgmr.msra.gmra.mxu0 %v2424_v37 }
  0xaa   : > { %634 = vmatprep.mubr.bf16.mxu0 %v2427_v38 }
  0xb1   : > { %635 = vmatmul.mubr.bf16.gmra.mxu0 %v2429_v39 }
  0xb2   : > { %642 = vmatprep.mubr.bf16.mxu0 %v2430_v40 }
  0xb9   : > { %643 = vmatmul.mubr.bf16.gmra.mxu0 %v2432_v41 }
  0xba   : > { %650 = vmatprep.mubr.bf16.mxu0 %v2433_v42 }
  0xc1   : > { %651 = vmatmul.mubr.bf16.gmra.mxu0 %v2435_v43 }
  0xc2   : > { %658 = vmatprep.mubr.bf16.mxu0 %v2436_v44 }
  0xc9   : > { %659 = vmatmul.mubr.bf16.gmra.mxu0 %v2438_v45 }
  0xca   : > { %666 = vmatprep.mubr.bf16.mxu0 %v2439_v46 }
  0xd1   : > { %667 = vmatmul.mubr.bf16.gmra.mxu0 %v2441_v47 }
  0xd2   : > { %674 = vmatprep.mubr.bf16.mxu0 %v2442_v48 }
  0xd9   : > { %675 = vmatmul.mubr.bf16.gmra.mxu0 %v2444_v49 }
  0xda   : > { %682 = vmatprep.mubr.bf16.mxu0 %v2445_v50 }
  0xe1   : > { %683 = vmatmul.mubr.bf16.gmra.mxu0 %v2447_v51 }
 0x169   : > { %v2122_v56 = vpop.f32.mrf.mxu0 }
 0x16b   : > { %v2123_v57 = vpop.f32.mrf.mxu0 }
 0x16c   : > { %v2124_v60 = vadd.f32 %v2123_v57, %v2122_v56 }
 0x16d   : > { %v2125_v58 = vpop.f32.mrf.mxu0 }
 0x16f   : > { %v2126_v59 = vpop.f32.mrf.mxu0 }
 0x170   : > { %v2127_v61 = vadd.f32 %v2126_v59, %v2125_v58 }
 0x171   : > { %v2128_v62 = vpop.f32.mrf.mxu0 }
 0x172   : > { %v691_v63 = vpack.c.bf16 %v2127_v61, %v2124_v60 }
 0x173   : > { %v2129_v0 = vpop.f32.mrf.mxu0 }
 0x174   : > { %2282 = vmatprep.mubr.bf16.mxu1 %v691_v63  ;;  %v2130_v3 = vadd.f32 %v2129_v0, %v2128_v62 }
 0x175   : > { %v2131_v1 = vpop.f32.mrf.mxu0 }
 0x177   : > { %v2132_v2 = vpop.f32.mrf.mxu0 }
 0x178   : > { %v2133_v4 = vadd.f32 %v2132_v2, %v2131_v1 }
 0x179   : > { %v2134_v5 = vpop.f32.mrf.mxu0 }
 0x17a   : > { %v692_v6 = vpack.c.bf16 %v2133_v4, %v2130_v3 }
 0x17b   : > { %v2135_v7 = vpop.f32.mrf.mxu0 }
 0x17c   : > { %2283 = vmatmul.mubr.bf16.vlgmr.msra.gmra.mxu1 %v692_v6  ;;  %v2136_v10 = vadd.f32 %v2135_v7, %v2134_v5 }
 0x17d   : > { %v2137_v8 = vpop.f32.mrf.mxu0 }
 0x17f   : > { %v2138_v9 = vpop.f32.mrf.mxu0 }
 0x180   : > { %v2139_v11 = vadd.f32 %v2138_v9, %v2137_v8  ;;  %v3106_v8 = vld [vmem:[%s2990_s24] ss:$0 sm:$0xff] }
 0x181   : > { %v2140_v12 = vpop.f32.mrf.mxu0 }
 0x182   : > { %v693_v13 = vpack.c.bf16 %v2139_v11, %v2136_v10 }
 0x183   : > { %v2141_v14 = vpop.f32.mrf.mxu0 }
 0x184   : > { %2286 = vmatprep.mubr.bf16.mxu1 %v693_v13  ;;  %v2142_v37 = vadd.f32 %v2141_v14, %v2140_v12 }
 0x185   : > { %v2143_v15 = vpop.f32.mrf.mxu0 }
 0x187   : > { %v2144_v16 = vpop.f32.mrf.mxu0 }
 0x188   : > { %v2145_v38 = vadd.f32 %v2144_v16, %v2143_v15 }
 0x189   : > { %v2146_v39 = vpop.f32.mrf.mxu0 }
 0x18a   : > { %v694_v40 = vpack.c.bf16 %v2145_v38, %v2142_v37 }
 0x18b   : > { %v2147_v41 = vpop.f32.mrf.mxu0 }
 0x18c   : > { %2287 = vmatmul.mubr.bf16.gmra.mxu1 %v694_v40  ;;  %v2148_v44 = vadd.f32 %v2147_v41, %v2146_v39 }
 0x18d   : > { %v2149_v42 = vpop.f32.mrf.mxu0 }
 0x18f   : > { %v2150_v43 = vpop.f32.mrf.mxu0 }
 0x190   : > { %v2151_v45 = vadd.f32 %v2150_v43, %v2149_v42 }
 0x191   : > { %v2152_v46 = vpop.f32.mrf.mxu0 }
 0x192   : > { %v695_v47 = vpack.c.bf16 %v2151_v45, %v2148_v44 }
 0x193   : > { %v2153_v48 = vpop.f32.mrf.mxu0 }
 0x194   : > { %2290 = vmatprep.mubr.bf16.mxu1 %v695_v47  ;;  %v2154_v51 = vadd.f32 %v2153_v48, %v2152_v46 }
 0x195   : > { %v2155_v49 = vpop.f32.mrf.mxu0 }
 0x197   : > { %v2156_v50 = vpop.f32.mrf.mxu0 }
 0x198   : > { %v2157_v56 = vadd.f32 %v2156_v50, %v2155_v49 }
 0x199   : > { %v2158_v57 = vpop.f32.mrf.mxu0 }
 0x19a   : > { %v696_v58 = vpack.c.bf16 %v2157_v56, %v2154_v51 }
 0x19b   : > { %v2159_v59 = vpop.f32.mrf.mxu0 }
 0x19c   : > { %2291 = vmatmul.mubr.bf16.gmra.mxu1 %v696_v58  ;;  %v2160_v62 = vadd.f32 %v2159_v59, %v2158_v57 }
 0x19d   : > { %v2161_v60 = vpop.f32.mrf.mxu0 }
 0x19f   : > { %v2162_v61 = vpop.f32.mrf.mxu0 }
 0x1a0   : > { %v2163_v63 = vadd.f32 %v2162_v61, %v2161_v60 }
 0x1a1   : > { %v2164_v0 = vpop.f32.mrf.mxu0 }
 0x1a2   : > { %v697_v1 = vpack.c.bf16 %v2163_v63, %v2160_v62 }
 0x1a3   : > { %v2165_v2 = vpop.f32.mrf.mxu0 }
 0x1a4   : > { %2294 = vmatprep.mubr.bf16.mxu1 %v697_v1  ;;  %v2166_v5 = vadd.f32 %v2165_v2, %v2164_v0 }
 0x1a5   : > { %v2167_v3 = vpop.f32.mrf.mxu0 }
 0x1a7   : > { %v2168_v4 = vpop.f32.mrf.mxu0 }
 0x1a8   : > { %v2169_v6 = vadd.f32 %v2168_v4, %v2167_v3 }
 0x1aa   : > { %v698_v7 = vpack.c.bf16 %v2169_v6, %v2166_v5 }
 0x1ac   : > { %2295 = vmatmul.mubr.bf16.gmra.mxu1 %v698_v7 }
 0x23c   : > { %v2284_v9 = vpop.f32.mrf.mxu1 }
 0x23d   : > { %v3109_v10 = vadd.f32 %v2284_v9, %v3106_v8 }
 0x23e   : > { %v787_v11 = vpop.f32.mrf.mxu1 }
 0x23f   : > { %v3112_v12 = vadd.f32 %v3106_v8, %v787_v11 }
 0x240   : > { %v2285_v13 = vpop.f32.mrf.mxu1 }
 0x241   : > { %v3115_v14 = vadd.f32 %v2285_v13, %v3106_v8 }
 0x242   : > { %v790_v15 = vpop.f32.mrf.mxu1 }
 0x243   : > { %v3118_v16 = vadd.f32 %v3106_v8, %v790_v15 }
 0x24c   : > { %v2288_v37 = vpop.f32.mrf.mxu1 }
 0x24d   : > { %v3121_v38 = vadd.f32 %v2288_v37, %v3106_v8 }
 0x24e   : > { %v803_v39 = vpop.f32.mrf.mxu1 }
 0x24f   : > { %v3124_v40 = vadd.f32 %v3106_v8, %v803_v39 }
 0x250   : > { %v2289_v41 = vpop.f32.mrf.mxu1 }
 0x251   : > { %v3127_v42 = vadd.f32 %v2289_v41, %v3106_v8 }
 0x252   : > { %v806_v43 = vpop.f32.mrf.mxu1 }
 0x253   : > { %v3130_v44 = vadd.f32 %v3106_v8, %v806_v43 }
 0x25c   : > { %v2292_v45 = vpop.f32.mrf.mxu1 }
 0x25d   : > { %v3133_v46 = vadd.f32 %v2292_v45, %v3106_v8 }
 0x25e   : > { %v819_v47 = vpop.f32.mrf.mxu1 }
 0x25f   : > { %v3136_v48 = vadd.f32 %v3106_v8, %v819_v47 }
 0x260   : > { %v2293_v49 = vpop.f32.mrf.mxu1 }
 0x261   : > { %v3139_v50 = vadd.f32 %v2293_v49, %v3106_v8 }
 0x262   : > { %v822_v51 = vpop.f32.mrf.mxu1 }
 0x263   : > { %v3142_v56 = vadd.f32 %v3106_v8, %v822_v51 }
 0x26c   : > { %v2296_v57 = vpop.f32.mrf.mxu1 }
 0x26d   : > { %v3145_v58 = vadd.f32 %v2296_v57, %v3106_v8 }
 0x26e   : > { %v835_v59 = vpop.f32.mrf.mxu1 }
 0x26f   : > { %v3148_v60 = vadd.f32 %v3106_v8, %v835_v59  ;;  %853 = sbr.rel (%p1921_p10) target bundleno = 638 (0x27e), region = 60 }
 0x270   : > { %v2297_v61 = vpop.f32.mrf.mxu1 }
 0x271   : > { %v3151_v62 = vadd.f32 %v2297_v61, %v3106_v8 }
 0x272   : > { %v838_v63 = vpop.f32.mrf.mxu1 }
 0x273   : > { %v3154_v0 = vadd.f32 %v3106_v8, %v838_v63 }
 0x274   : > { %v854_v1 = vmax.f32 %v3112_v12, 0.0  ;;  %v855_v2 = vmax.f32 %v3118_v16, 0.0  ;;  %v856_v3 = vmax.f32 %v3109_v10, 0.0  ;;  %v857_v4 = vmax.f32 %v3115_v14, 0.0 }
 0x275   : > { %v858_v5 = vmax.f32 %v3124_v40, 0.0  ;;  %v859_v6 = vmax.f32 %v3130_v44, 0.0  ;;  %v860_v7 = vmax.f32 %v3121_v38, 0.0  ;;  %v861_v9 = vmax.f32 %v3127_v42, 0.0 }
 0x276   : > { %v2015_v11 = vpack.c.bf16 %v855_v2, %v854_v1  ;;  %v2020_v13 = vpack.c.bf16 %v857_v4, %v856_v3  ;;  %v862_v15 = vmax.f32 %v3136_v48, 0.0  ;;  %v863_v37 = vmax.f32 %v3142_v56, 0.0 }
 0x277   : > { %v2025_v39 = vpack.c.bf16 %v859_v6, %v858_v5  ;;  %v2030_v41 = vpack.c.bf16 %v861_v9, %v860_v7  ;;  %v864_v43 = vmax.f32 %v3133_v46, 0.0  ;;  %v865_v45 = vmax.f32 %v3139_v50, 0.0 }
 0x278   : > { %2016 = vst [vmem:[%s938_s6] sm:$0xff] %v2015_v11   ;;  %2092 = vst [vmem:[%s938_s6 + $0x8] sm:$0xff] %v2020_v13   ;;  %v2035_v47 = vpack.c.bf16 %v863_v37, %v862_v15  ;;  %v866_v49 = vmax.f32 %v3148_v60, 0.0  ;;  %v867_v51 = vmax.f32 %v3154_v0, 0.0  ;;  %v868_v57 = vmax.f32 %v3145_v58, 0.0 }
 0x279   : > { %2093 = vst [vmem:[%s938_s6 + $0x10] sm:$0xff] %v2025_v39   ;;  %2094 = vst [vmem:[%s938_s6 + $0x18] sm:$0xff] %v2030_v41   ;;  %v2040_v59 = vpack.c.bf16 %v865_v45, %v864_v43  ;;  %v869_v61 = vmax.f32 %v3151_v62, 0.0 }
 0x27a   : > { %2095 = vst [vmem:[%s938_s6 + $0x20] sm:$0xff] %v2035_v47   ;;  %v2045_v63 = vpack.c.bf16 %v867_v51, %v866_v49 }
 0x27b   : > { %2096 = vst [vmem:[%s938_s6 + $0x28] sm:$0xff] %v2040_v59   ;;  %v2050_v1 = vpack.c.bf16 %v869_v61, %v868_v57 }
 0x27c   : > { %2097 = vst [vmem:[%s938_s6 + $0x30] sm:$0xff] %v2045_v63  }
 0x27d   : > { %2098 = vst [vmem:[%s938_s6 + $0x38] sm:$0xff] %v2050_v1  }
 0x27e PF: > { %p1939_p1 = scmp.ne.s32.totalorder %s2843_s19, 5 }
 0x280   : > { %958 = sbr.rel (%p1939_p1) target bundleno = 996 (0x3e4), region = 64 }
 0x285   : > { %v959_v2 = vlaneseq }
 0x287   : > { %v960_v3 = vand.u32 127, %v959_v2 }
 0x289   : > { %vm961_vm0 = vcmp.lt.s32.totalorder %v960_v3, 7 }
 0x28a   : > { %v962_v4 = vsel %vm961_vm0, %v3112_v12, -inf  ;;  %v964_v5 = vsel %vm961_vm0, %v3109_v10, -inf  ;;  %v963_v6 = vsel %vm961_vm0, %v3118_v16, -inf  ;;  %v965_v7 = vsel %vm961_vm0, %v3115_v14, -inf }
 0x28b   : > { %978 = vmax.xlane.f32.xlu0 %v962_v4  ;;  %982 = vmax.xlane.f32.xlu1 %v964_v5  ;;  %v966_v9 = vsel %vm961_vm0, %v3124_v40, -inf  ;;  %v967_v11 = vsel %vm961_vm0, %v3130_v44, -inf  ;;  %v968_v10 = vsel %vm961_vm0, %v3121_v38, -inf  ;;  %v969_v12 = vsel %vm961_vm0, %v3127_v42, -inf }
 0x28c   : > { %v970_v14 = vsel %vm961_vm0, %v3136_v48, -inf  ;;  %v971_v16 = vsel %vm961_vm0, %v3142_v56, -inf  ;;  %v972_v40 = vsel %vm961_vm0, %v3133_v46, -inf  ;;  %v973_v44 = vsel %vm961_vm0, %v3139_v50, -inf }
 0x28d   : > { %v3205_v38 = vsel %vm961_vm0, %v3148_v60, -inf  ;;  %v3209_v42 = vsel %vm961_vm0, %v3154_v0, -inf  ;;  %v3215_v46 = vsel %vm961_vm0, %v3145_v58, -inf  ;;  %v3219_v48 = vsel %vm961_vm0, %v3151_v62, -inf }
 0x28f   : > { %980 = vmax.xlane.f32.xlu0 %v963_v6  ;;  %984 = vmax.xlane.f32.xlu1 %v965_v7 }
 0x293   : > { %986 = vmax.xlane.f32.xlu0 %v966_v9  ;;  %988 = vmax.xlane.f32.xlu1 %v967_v11 }
 0x297   : > { %990 = vmax.xlane.f32.xlu0 %v968_v10  ;;  %992 = vmax.xlane.f32.xlu1 %v969_v12 }
 0x29b   : > { %994 = vmax.xlane.f32.xlu0 %v970_v14  ;;  %996 = vmax.xlane.f32.xlu1 %v971_v16 }
 0x29f   : > { %998 = vmax.xlane.f32.xlu0 %v972_v40  ;;  %1000 = vmax.xlane.f32.xlu1 %v973_v44 }
 0x2a3   : > { %1002 = vmax.xlane.f32.xlu0 %v3205_v38  ;;  %1004 = vmax.xlane.f32.xlu1 %v3209_v42 }
 0x2a7   : > { %1006 = vmax.xlane.f32.xlu0 %v3215_v46  ;;  %1008 = vmax.xlane.f32.xlu1 %v3219_v48 }
 0x314   : > { %v979_v50 = vpop.xlane.xlu0 %978  ;;  %v983_v56 = vpop.xlane.xlu1 %982 }
 0x315   : > { %v3223_v60 = vsub.f32 %v962_v4, %v979_v50  ;;  %v3225_v0 = vsub.f32 %v964_v5, %v983_v56 }
 0x317   : > { %v1026_v13 = vmul.f32 1.442695, %v3223_v60  ;;  %v1030_v15 = vmul.f32 1.442695, %v3225_v0 }
 0x318   : > { %v981_v58 = vpop.xlane.xlu0 %980  ;;  %v985_v37 = vpop.xlane.xlu1 %984 }
 0x319   : > { %2456 = vpow2.f32 %v1026_v13  ;;  %v3229_v39 = vsub.f32 %v963_v6, %v981_v58  ;;  %v3231_v62 = vsub.f32 %v965_v7, %v985_v37 }
 0x31a   : > { %2458 = vpow2.f32 %v1030_v15 }
 0x31b   : > { %v1028_v41 = vmul.f32 1.442695, %v3229_v39  ;;  %v1032_v43 = vmul.f32 1.442695, %v3231_v62 }
 0x31c   : > { %v987_v45 = vpop.xlane.xlu0 %986  ;;  %v989_v47 = vpop.xlane.xlu1 %988 }
 0x31d   : > { %2460 = vpow2.f32 %v1028_v41  ;;  %v3235_v49 = vsub.f32 %v966_v9, %v987_v45  ;;  %v3237_v51 = vsub.f32 %v967_v11, %v989_v47 }
 0x31e   : > { %2462 = vpow2.f32 %v1032_v43 }
 0x31f   : > { %v1034_v57 = vmul.f32 1.442695, %v3235_v49  ;;  %v1036_v59 = vmul.f32 1.442695, %v3237_v51 }
 0x320   : > { %v991_v61 = vpop.xlane.xlu0 %990  ;;  %v993_v63 = vpop.xlane.xlu1 %992 }
 0x321   : > { %2464 = vpow2.f32 %v1034_v57  ;;  %v3241_v1 = vsub.f32 %v968_v10, %v991_v61  ;;  %v3243_v2 = vsub.f32 %v969_v12, %v993_v63 }
 0x322   : > { %2466 = vpow2.f32 %v1036_v59 }
 0x323   : > { %v1038_v3 = vmul.f32 1.442695, %v3241_v1  ;;  %v1040_v4 = vmul.f32 1.442695, %v3243_v2 }
 0x324   : > { %v995_v5 = vpop.xlane.xlu0 %994  ;;  %v997_v6 = vpop.xlane.xlu1 %996 }
 0x325   : > { %2468 = vpow2.f32 %v1038_v3  ;;  %v3247_v7 = vsub.f32 %v970_v14, %v995_v5  ;;  %v3249_v9 = vsub.f32 %v971_v16, %v997_v6 }
 0x326   : > { %v2457_v11 = vpop.eup %2456  ;;  %2470 = vpow2.f32 %v1040_v4 }
 0x327   : > { %v1042_v50 = vmul.f32 1.442695, %v3247_v7  ;;  %1058 = vadd.xlane.f32.xlu0 %v2457_v11  ;;  %v1044_v10 = vmul.f32 1.442695, %v3249_v9  ;;  %v2459_v12 = vpop.eup %2458 }
 0x328   : > { %v999_v56 = vpop.xlane.xlu0 %998  ;;  %v1001_v13 = vpop.xlane.xlu1 %1000 }
 0x329   : > { %2472 = vpow2.f32 %v1042_v50  ;;  %v3253_v15 = vsub.f32 %v972_v40, %v999_v56  ;;  %v3255_v58 = vsub.f32 %v973_v44, %v1001_v13 }
 0x32a   : > { %v2461_v37 = vpop.eup %2460  ;;  %2474 = vpow2.f32 %v1044_v10 }
 0x32b   : > { %v1046_v14 = vmul.f32 1.442695, %v3253_v15  ;;  %1062 = vadd.xlane.f32.xlu0 %v2459_v12  ;;  %1060 = vadd.xlane.f32.xlu1 %v2461_v37  ;;  %v1048_v16 = vmul.f32 1.442695, %v3255_v58  ;;  %v2463_v41 = vpop.eup %2462 }
 0x32c   : > { %v1003_v43 = vpop.xlane.xlu0 %1002  ;;  %v1005_v45 = vpop.xlane.xlu1 %1004 }
 0x32d   : > { %2476 = vpow2.f32 %v1046_v14  ;;  %v3260_v47 = vsub.f32 %v3205_v38, %v1003_v43  ;;  %v3263_v40 = vsub.f32 %v3209_v42, %v1005_v45 }
 0x32e   : > { %v2465_v44 = vpop.eup %2464  ;;  %2478 = vpow2.f32 %v1048_v16 }
 0x32f   : > { %v1050_v57 = vmul.f32 1.442695, %v3260_v47  ;;  %1064 = vadd.xlane.f32.xlu1 %v2463_v41  ;;  %1066 = vadd.xlane.f32.xlu0 %v2465_v44  ;;  %v1052_v59 = vmul.f32 1.442695, %v3263_v40  ;;  %v2467_v61 = vpop.eup %2466 }
 0x330   : > { %v1007_v63 = vpop.xlane.xlu0 %1006  ;;  %v1009_v3 = vpop.xlane.xlu1 %1008 }
 0x331   : > { %2480 = vpow2.f32 %v1050_v57  ;;  %v3268_v4 = vsub.f32 %v3215_v46, %v1007_v63  ;;  %v3271_v38 = vsub.f32 %v3219_v48, %v1009_v3 }
 0x332   : > { %v2469_v42 = vpop.eup %2468  ;;  %2482 = vpow2.f32 %v1052_v59 }
 0x333   : > { %v1054_v5 = vmul.f32 1.442695, %v3268_v4  ;;  %1068 = vadd.xlane.f32.xlu1 %v2467_v61  ;;  %1070 = vadd.xlane.f32.xlu0 %v2469_v42  ;;  %v1056_v6 = vmul.f32 1.442695, %v3271_v38  ;;  %v2471_v11 = vpop.eup %2470 }
 0x335   : > { %2484 = vpow2.f32 %v1054_v5 }
 0x336   : > { %v2473_v50 = vpop.eup %2472  ;;  %2486 = vpow2.f32 %v1056_v6 }
 0x337   : > { %1072 = vadd.xlane.f32.xlu1 %v2471_v11  ;;  %1074 = vadd.xlane.f32.xlu0 %v2473_v50  ;;  %v2475_v10 = vpop.eup %2474 }
 0x33a   : > { %v2477_v46 = vpop.eup %2476 }
 0x33b   : > { %1076 = vadd.xlane.f32.xlu1 %v2475_v10  ;;  %1078 = vadd.xlane.f32.xlu0 %v2477_v46  ;;  %v2479_v48 = vpop.eup %2478 }
 0x33e   : > { %v2481_v12 = vpop.eup %2480 }
 0x33f   : > { %1080 = vadd.xlane.f32.xlu1 %v2479_v48  ;;  %1082 = vadd.xlane.f32.xlu0 %v2481_v12  ;;  %v2483_v56 = vpop.eup %2482 }
 0x342   : > { %v2485_v13 = vpop.eup %2484 }
 0x343   : > { %1084 = vadd.xlane.f32.xlu1 %v2483_v56  ;;  %1086 = vadd.xlane.f32.xlu0 %v2485_v13  ;;  %v2487_v37 = vpop.eup %2486 }
 0x347   : > { %1088 = vadd.xlane.f32.xlu1 %v2487_v37 }
 0x3b0   : > { %v1059_v14 = vpop.xlane.xlu0 %1058 }
 0x3b1   : > { %2488 = vlog2.f32 %v1059_v14 }
 0x3b4   : > { %v1061_v16 = vpop.xlane.xlu1 %1060  ;;  %v1063_v41 = vpop.xlane.xlu0 %1062 }
 0x3b5   : > { %2490 = vlog2.f32 %v1061_v16 }
 0x3b6   : > { %2492 = vlog2.f32 %v1063_v41 }
 0x3b8   : > { %v1065_v43 = vpop.xlane.xlu1 %1064  ;;  %v1067_v45 = vpop.xlane.xlu0 %1066 }
 0x3b9   : > { %2494 = vlog2.f32 %v1065_v43 }
 0x3ba   : > { %2496 = vlog2.f32 %v1067_v45 }
 0x3bc   : > { %v1069_v44 = vpop.xlane.xlu1 %1068  ;;  %v1071_v57 = vpop.xlane.xlu0 %1070 }
 0x3bd   : > { %2498 = vlog2.f32 %v1069_v44 }
 0x3be   : > { %v2489_v59 = vpop.eup %2488  ;;  %2500 = vlog2.f32 %v1071_v57 }
 0x3bf   : > { %v1091_v61 = vmul.f32 0.6931472, %v2489_v59 }
 0x3c0   : > { %v1073_v63 = vpop.xlane.xlu1 %1072  ;;  %v1075_v3 = vpop.xlane.xlu0 %1074 }
 0x3c1   : > { %v1122_v42 = vsub.f32 %v3223_v60, %v1091_v61  ;;  %2502 = vlog2.f32 %v1073_v63 }
 0x3c2   : > { %v2491_v5 = vpop.eup %2490  ;;  %2504 = vlog2.f32 %v1075_v3 }
 0x3c3   : > { %v2493_v6 = vpop.eup %2492  ;;  %1138 = vst [vmem:[#allocation10] sm:$0xff] %v1122_v42  ;;  %v1093_v11 = vmul.f32 0.6931472, %v2491_v5 }
 0x3c4   : > { %v1095_v50 = vmul.f32 0.6931472, %v2493_v6  ;;  %v1077_v10 = vpop.xlane.xlu1 %1076  ;;  %v1079_v46 = vpop.xlane.xlu0 %1078 }
 0x3c5   : > { %v1123_v48 = vsub.f32 %v3229_v39, %v1093_v11  ;;  %2506 = vlog2.f32 %v1077_v10 }
 0x3c6   : > { %v2495_v12 = vpop.eup %2494  ;;  %v1124_v56 = vsub.f32 %v3225_v0, %v1095_v50  ;;  %2508 = vlog2.f32 %v1079_v46 }
 0x3c7   : > { %v2497_v13 = vpop.eup %2496  ;;  %1139 = vst [vmem:[#allocation10 + $0x8] sm:$0xff] %v1123_v48  ;;  %v1097_v37 = vmul.f32 0.6931472, %v2495_v12 }
 0x3c8   : > { %1140 = vst [vmem:[#allocation10 + $0x10] sm:$0xff] %v1124_v56  ;;  %v1099_v60 = vmul.f32 0.6931472, %v2497_v13  ;;  %v1081_v14 = vpop.xlane.xlu1 %1080  ;;  %v1083_v16 = vpop.xlane.xlu0 %1082 }
 0x3c9   : > { %v1125_v41 = vsub.f32 %v3231_v62, %v1097_v37  ;;  %2510 = vlog2.f32 %v1081_v14 }
 0x3ca   : > { %v2499_v43 = vpop.eup %2498  ;;  %v1126_v45 = vsub.f32 %v3235_v49, %v1099_v60  ;;  %2512 = vlog2.f32 %v1083_v16 }
 0x3cb   : > { %v2501_v39 = vpop.eup %2500  ;;  %1141 = vst [vmem:[#allocation10 + $0x18] sm:$0xff] %v1125_v41  ;;  %v1101_v44 = vmul.f32 0.6931472, %v2499_v43 }
 0x3cc   : > { %1142 = vst [vmem:[#allocation10 + $0x20] sm:$0xff] %v1126_v45  ;;  %v1103_v0 = vmul.f32 0.6931472, %v2501_v39  ;;  %v1085_v57 = vpop.xlane.xlu1 %1084  ;;  %v1087_v59 = vpop.xlane.xlu0 %1086 }
 0x3cd   : > { %v1127_v61 = vsub.f32 %v3237_v51, %v1101_v44  ;;  %2514 = vlog2.f32 %v1085_v57 }
 0x3ce   : > { %v2503_v63 = vpop.eup %2502  ;;  %v1128_v3 = vsub.f32 %v3241_v1, %v1103_v0  ;;  %2516 = vlog2.f32 %v1087_v59 }
 0x3cf   : > { %v2505_v62 = vpop.eup %2504  ;;  %1143 = vst [vmem:[#allocation10 + $0x28] sm:$0xff] %v1127_v61  ;;  %v1105_v42 = vmul.f32 0.6931472, %v2503_v63 }
 0x3d0   : > { %1144 = vst [vmem:[#allocation10 + $0x30] sm:$0xff] %v1128_v3  ;;  %v1107_v49 = vmul.f32 0.6931472, %v2505_v62  ;;  %v1089_v5 = vpop.xlane.xlu1 %1088 }
 0x3d1   : > { %v1129_v6 = vsub.f32 %v3243_v2, %v1105_v42  ;;  %2518 = vlog2.f32 %v1089_v5 }
 0x3d2   : > { %v2507_v11 = vpop.eup %2506  ;;  %v1130_v50 = vsub.f32 %v3247_v7, %v1107_v49 }
 0x3d3   : > { %v2509_v10 = vpop.eup %2508  ;;  %1145 = vst [vmem:[#allocation10 + $0x38] sm:$0xff] %v1129_v6  ;;  %v1109_v51 = vmul.f32 0.6931472, %v2507_v11 }
 0x3d4   : > { %1146 = vst [vmem:[#allocation10 + $0x40] sm:$0xff] %v1130_v50  ;;  %v1111_v46 = vmul.f32 0.6931472, %v2509_v10 }
 0x3d5   : > { %v1131_v1 = vsub.f32 %v3249_v9, %v1109_v51 }
 0x3d6   : > { %v2511_v48 = vpop.eup %2510  ;;  %v1132_v12 = vsub.f32 %v3253_v15, %v1111_v46 }
 0x3d7   : > { %v2513_v56 = vpop.eup %2512  ;;  %1147 = vst [vmem:[#allocation10 + $0x48] sm:$0xff] %v1131_v1  ;;  %v1113_v13 = vmul.f32 0.6931472, %v2511_v48 }
 0x3d8   : > { %1148 = vst [vmem:[#allocation10 + $0x50] sm:$0xff] %v1132_v12  ;;  %v1115_v37 = vmul.f32 0.6931472, %v2513_v56 }
 0x3d9   : > { %v1133_v2 = vsub.f32 %v3255_v58, %v1113_v13 }
 0x3da   : > { %v2515_v60 = vpop.eup %2514  ;;  %v1134_v7 = vsub.f32 %v3260_v47, %v1115_v37 }
 0x3db   : > { %v2517_v14 = vpop.eup %2516  ;;  %1149 = vst [vmem:[#allocation10 + $0x58] sm:$0xff] %v1133_v2  ;;  %v1117_v16 = vmul.f32 0.6931472, %v2515_v60 }
 0x3dc   : > { %1150 = vst [vmem:[#allocation10 + $0x60] sm:$0xff] %v1134_v7  ;;  %v1119_v41 = vmul.f32 0.6931472, %v2517_v14 }
 0x3dd   : > { %v1135_v9 = vsub.f32 %v3263_v40, %v1117_v16 }
 0x3de   : > { %v2519_v43 = vpop.eup %2518  ;;  %v1136_v15 = vsub.f32 %v3268_v4, %v1119_v41 }
 0x3df   : > { %1151 = vst [vmem:[#allocation10 + $0x68] sm:$0xff] %v1135_v9  ;;  %v1121_v45 = vmul.f32 0.6931472, %v2519_v43 }
 0x3e0   : > { %1152 = vst [vmem:[#allocation10 + $0x70] sm:$0xff] %v1136_v15 }
 0x3e1   : > { %v1137_v39 = vsub.f32 %v3271_v38, %v1121_v45 }
 0x3e3   : > { %1153 = vst [vmem:[#allocation10 + $0x78] sm:$0xff] %v1137_v39 }
 0x3e4 PF: > { %2186 = vmatprep.subr.bf16.mxu1 %v3013_v20  ;;  %2298 = vmatprep.subr.bf16.mxu0 %v2998_v17  ;;  %v2522_v58 = vld [vmem:[#allocation3 + $0x84] ss:$8 sps:$4 sm:$0xff]   ;;  %s1482_s8 = sadd.s32 (!%p1921_p10), 128, %s3000_s22 }
 0x3e5   : > { %2187 = vmatpush3.bf16.msra.mxu1 %v3017_v21  ;;  %2299 = vmatpush3.bf16.msra.mxu0 %v2998_v17  ;;  %v2520_v17 = vld [vmem:[#allocation3 + $0x80] ss:$8 sps:$4 sm:$0xff]   ;;  %v2526_v20 = vld [vmem:[#allocation3 + $0xa4] ss:$8 sps:$4 sm:$0xff]   ;;  %s1539_s30 = sshra.s32 (!%p1921_p10), %s1482_s8, 3 }
 0x3e6   : > { %2188 = vmatprep.subr.bf16.mxu1 %v3021_v22  ;;  %2300 = vmatprep.subr.bf16.mxu0 %v3004_v18  ;;  %v2528_v21 = vld [vmem:[#allocation3 + $0xa0] ss:$8 sps:$4 sm:$0xff]   ;;  %v2529_v22 = vld [vmem:[#allocation3 + $0xb4] ss:$8 sps:$4 sm:$0xff]   ;;  %s1973_s28 = sshll.u32 (!%p1921_p10), %s1539_s30, 2 }
 0x3e7   : > { %1285 = vmatprep.mubr.bf16.mxu1 %v2522_v58  ;;  %s1542_s9 = scalar_lea.vmem (!%p1921_p10), [#allocation2], %s1973_s28 }
 0x3e9   : > { %2189 = vmatpush3.bf16.msra.mxu1 %v3025_v23  ;;  %2301 = vmatpush3.bf16.msra.mxu0 %v3004_v18  ;;  %v2523_v18 = vld [vmem:[#allocation3 + $0x94] ss:$8 sps:$4 sm:$0xff]   ;;  %v2531_v23 = vld [vmem:[#allocation3 + $0xb0] ss:$8 sps:$4 sm:$0xff]  }
 0x3ea   : > { %2190 = vmatprep.subr.bf16.mxu1 %v3030_v24  ;;  %2302 = vmatprep.subr.bf16.mxu0 %v3008_v19  ;;  %v2532_v24 = vld [vmem:[#allocation3 + $0xc4] ss:$8 sps:$4 sm:$0xff]  }
 0x3ed   : > { %2191 = vmatpush3.bf16.msra.mxu1 %v3035_v25  ;;  %2303 = vmatpush3.bf16.msra.mxu0 %v3008_v19  ;;  %v2525_v19 = vld [vmem:[#allocation3 + $0x90] ss:$8 sps:$4 sm:$0xff]   ;;  %v2534_v25 = vld [vmem:[#allocation3 + $0xc0] ss:$8 sps:$4 sm:$0xff]  }
 0x3ee   : > { %2192 = vmatprep.subr.bf16.mxu1 %v3040_v26  ;;  %2304 = vmatprep.subr.bf16.mxu0 %v3062_v32  ;;  %v2535_v26 = vld [vmem:[#allocation3 + $0xd4] ss:$8 sps:$4 sm:$0xff]  }
 0x3f1   : > { %2193 = vmatpush3.bf16.msra.mxu1 %v3044_v27  ;;  %2305 = vmatpush3.bf16.msra.mxu0 %v3062_v32  ;;  %v2537_v27 = vld [vmem:[#allocation3 + $0xd0] ss:$8 sps:$4 sm:$0xff]  }
 0x3f2   : > { %2194 = vmatprep.subr.bf16.mxu1 %v3048_v28  ;;  %2306 = vmatprep.subr.bf16.mxu0 %v3086_v52  ;;  %v2538_v28 = vld [vmem:[#allocation3 + $0xe4] ss:$8 sps:$4 sm:$0xff]  }
 0x3f5   : > { %2195 = vmatpush3.bf16.msra.mxu1 %v3051_v29  ;;  %2307 = vmatpush3.bf16.msra.mxu0 %v3086_v52  ;;  %v2540_v29 = vld [vmem:[#allocation3 + $0xe0] ss:$8 sps:$4 sm:$0xff]  }
 0x3f6   : > { %2196 = vmatprep.subr.bf16.mxu1 %v3055_v30  ;;  %2308 = vmatprep.subr.bf16.mxu0 %v3091_v53  ;;  %v2541_v30 = vld [vmem:[#allocation3 + $0xf4] ss:$8 sps:$4 sm:$0xff]  }
 0x3f9   : > { %2197 = vmatpush3.bf16.msra.mxu1 %v3059_v31  ;;  %2309 = vmatpush3.bf16.msra.mxu0 %v3091_v53  ;;  %v2543_v31 = vld [vmem:[#allocation3 + $0xf0] ss:$8 sps:$4 sm:$0xff]  }
 0x3fa   : > { %2198 = vmatprep.subr.bf16.mxu1 %v3068_v33  ;;  %2310 = vmatprep.subr.bf16.mxu0 %v3096_v54 }
 0x3fd   : > { %2199 = vmatpush3.bf16.msra.mxu1 %v3073_v34  ;;  %2311 = vmatpush3.bf16.msra.mxu0 %v3096_v54 }
 0x3fe   : > { %2200 = vmatprep.subr.bf16.mxu1 %v3077_v35  ;;  %2312 = vmatprep.subr.bf16.mxu0 %v3101_v55 }
 0x401   : > { %2201 = vmatpush3.bf16.msra.mxu1 %v3081_v36  ;;  %2313 = vmatpush3.bf16.msra.mxu0 %v3101_v55 }
 0x404   : > { %1286 = vmatmul.mubr.bf16.vlgmr.msra.gmra.mxu1 %v2520_v17 }
 0x405   : > { %1293 = vmatprep.mubr.bf16.mxu1 %v2523_v18 }
 0x40c   : > { %1294 = vmatmul.mubr.bf16.gmra.mxu1 %v2525_v19 }
 0x40d   : > { %1301 = vmatprep.mubr.bf16.mxu1 %v2526_v20 }
 0x414   : > { %1302 = vmatmul.mubr.bf16.gmra.mxu1 %v2528_v21 }
 0x415   : > { %1309 = vmatprep.mubr.bf16.mxu1 %v2529_v22 }
 0x41c   : > { %1310 = vmatmul.mubr.bf16.gmra.mxu1 %v2531_v23 }
 0x41d   : > { %1317 = vmatprep.mubr.bf16.mxu1 %v2532_v24 }
 0x424   : > { %1318 = vmatmul.mubr.bf16.gmra.mxu1 %v2534_v25 }
 0x425   : > { %1325 = vmatprep.mubr.bf16.mxu1 %v2535_v26 }
 0x42c   : > { %1326 = vmatmul.mubr.bf16.gmra.mxu1 %v2537_v27 }
 0x42d   : > { %1333 = vmatprep.mubr.bf16.mxu1 %v2538_v28 }
 0x434   : > { %1334 = vmatmul.mubr.bf16.gmra.mxu1 %v2540_v29 }
 0x435   : > { %1341 = vmatprep.mubr.bf16.mxu1 %v2541_v30 }
 0x43c   : > { %1342 = vmatmul.mubr.bf16.gmra.mxu1 %v2543_v31 }
 0x4c4   : > { %v2202_v32 = vpop.f32.mrf.mxu1 }
 0x4c6   : > { %v2203_v33 = vpop.f32.mrf.mxu1 }
 0x4c7   : > { %v2204_v36 = vadd.f32 %v2203_v33, %v2202_v32 }
 0x4c8   : > { %v2205_v34 = vpop.f32.mrf.mxu1 }
 0x4ca   : > { %v2206_v35 = vpop.f32.mrf.mxu1 }
 0x4cb   : > { %v2207_v52 = vadd.f32 %v2206_v35, %v2205_v34 }
 0x4cc   : > { %v2208_v53 = vpop.f32.mrf.mxu1 }
 0x4cd   : > { %v1350_v54 = vpack.c.bf16 %v2207_v52, %v2204_v36 }
 0x4ce   : > { %v2209_v55 = vpop.f32.mrf.mxu1 }
 0x4cf   : > { %2314 = vmatprep.mubr.bf16.mxu0 %v1350_v54  ;;  %v2210_v4 = vadd.f32 %v2209_v55, %v2208_v53 }
 0x4d0   : > { %v2211_v47 = vpop.f32.mrf.mxu1 }
 0x4d2   : > { %v2212_v40 = vpop.f32.mrf.mxu1 }
 0x4d3   : > { %v2213_v38 = vadd.f32 %v2212_v40, %v2211_v47 }
 0x4d4   : > { %v2214_v44 = vpop.f32.mrf.mxu1 }
 0x4d5   : > { %v1351_v0 = vpack.c.bf16 %v2213_v38, %v2210_v4 }
 0x4d6   : > { %v2215_v57 = vpop.f32.mrf.mxu1 }
 0x4d7   : > { %2315 = vmatmul.mubr.bf16.vlgmr.msra.gmra.mxu0 %v1351_v0  ;;  %v2216_v63 = vadd.f32 %v2215_v57, %v2214_v44 }
 0x4d8   : > { %v2217_v59 = vpop.f32.mrf.mxu1 }
 0x4da   : > { %v2218_v61 = vpop.f32.mrf.mxu1 }
 0x4db   : > { %v2219_v3 = vadd.f32 %v2218_v61, %v2217_v59 }
 0x4dc   : > { %v2220_v62 = vpop.f32.mrf.mxu1 }
 0x4dd   : > { %v1352_v42 = vpack.c.bf16 %v2219_v3, %v2216_v63 }
 0x4de   : > { %v2221_v49 = vpop.f32.mrf.mxu1 }
 0x4df   : > { %2318 = vmatprep.mubr.bf16.mxu0 %v1352_v42  ;;  %v2222_v11 = vadd.f32 %v2221_v49, %v2220_v62 }
 0x4e0   : > { %v2223_v5 = vpop.f32.mrf.mxu1 }
 0x4e2   : > { %v2224_v6 = vpop.f32.mrf.mxu1 }
 0x4e3   : > { %v2225_v50 = vadd.f32 %v2224_v6, %v2223_v5 }
 0x4e4   : > { %v2226_v10 = vpop.f32.mrf.mxu1 }
 0x4e5   : > { %v1353_v51 = vpack.c.bf16 %v2225_v50, %v2222_v11 }
 0x4e6   : > { %v2227_v46 = vpop.f32.mrf.mxu1 }
 0x4e7   : > { %2319 = vmatmul.mubr.bf16.gmra.mxu0 %v1353_v51  ;;  %v2228_v12 = vadd.f32 %v2227_v46, %v2226_v10 }
 0x4e8   : > { %v2229_v1 = vpop.f32.mrf.mxu1 }
 0x4ea   : > { %v2230_v48 = vpop.f32.mrf.mxu1 }
 0x4eb   : > { %v2231_v56 = vadd.f32 %v2230_v48, %v2229_v1 }
 0x4ec   : > { %v2232_v13 = vpop.f32.mrf.mxu1 }
 0x4ed   : > { %v1354_v37 = vpack.c.bf16 %v2231_v56, %v2228_v12 }
 0x4ee   : > { %v2233_v2 = vpop.f32.mrf.mxu1 }
 0x4ef   : > { %2322 = vmatprep.mubr.bf16.mxu0 %v1354_v37  ;;  %v2234_v14 = vadd.f32 %v2233_v2, %v2232_v13 }
 0x4f0   : > { %v2235_v60 = vpop.f32.mrf.mxu1 }
 0x4f2   : > { %v2236_v7 = vpop.f32.mrf.mxu1 }
 0x4f3   : > { %v2237_v16 = vadd.f32 %v2236_v7, %v2235_v60 }
 0x4f4   : > { %v2238_v41 = vpop.f32.mrf.mxu1 }
 0x4f5   : > { %v1355_v9 = vpack.c.bf16 %v2237_v16, %v2234_v14 }
 0x4f6   : > { %v2239_v43 = vpop.f32.mrf.mxu1 }
 0x4f7   : > { %2323 = vmatmul.mubr.bf16.gmra.mxu0 %v1355_v9  ;;  %v2240_v39 = vadd.f32 %v2239_v43, %v2238_v41 }
 0x4f8   : > { %v2241_v15 = vpop.f32.mrf.mxu1 }
 0x4fa   : > { %v2242_v45 = vpop.f32.mrf.mxu1 }
 0x4fb   : > { %v2243_v58 = vadd.f32 %v2242_v45, %v2241_v15 }
 0x4fc   : > { %v2244_v17 = vpop.f32.mrf.mxu1 }
 0x4fd   : > { %v1356_v18 = vpack.c.bf16 %v2243_v58, %v2240_v39 }
 0x4fe   : > { %v2245_v19 = vpop.f32.mrf.mxu1 }
 0x4ff   : > { %2326 = vmatprep.mubr.bf16.mxu0 %v1356_v18  ;;  %v2246_v22 = vadd.f32 %v2245_v19, %v2244_v17 }
 0x500   : > { %v2247_v20 = vpop.f32.mrf.mxu1 }
 0x502   : > { %v2248_v21 = vpop.f32.mrf.mxu1 }
 0x503   : > { %v2249_v23 = vadd.f32 %v2248_v21, %v2247_v20 }
 0x505   : > { %v1357_v24 = vpack.c.bf16 %v2249_v23, %v2246_v22 }
 0x507   : > { %2327 = vmatmul.mubr.bf16.gmra.mxu0 %v1357_v24 }
 0x597   : > { %v2316_v25 = vpop.f32.mrf.mxu0 }
 0x598   : > { %v3324_v26 = vadd.f32 %v2316_v25, %v3106_v8 }
 0x599   : > { %v1392_v27 = vpop.f32.mrf.mxu0 }
 0x59a   : > { %v3327_v28 = vadd.f32 %v3106_v8, %v1392_v27 }
 0x59b   : > { %v2317_v29 = vpop.f32.mrf.mxu0 }
 0x59c   : > { %v3330_v30 = vadd.f32 %v2317_v29, %v3106_v8 }
 0x59d   : > { %v1395_v31 = vpop.f32.mrf.mxu0 }
 0x59e   : > { %v3333_v32 = vadd.f32 %v3106_v8, %v1395_v31 }
 0x5a7   : > { %v2320_v33 = vpop.f32.mrf.mxu0 }
 0x5a8   : > { %v3336_v34 = vadd.f32 %v2320_v33, %v3106_v8 }
 0x5a9   : > { %v1408_v35 = vpop.f32.mrf.mxu0 }
 0x5aa   : > { %v3339_v36 = vadd.f32 %v3106_v8, %v1408_v35 }
 0x5ab   : > { %v2321_v52 = vpop.f32.mrf.mxu0 }
 0x5ac   : > { %v3342_v53 = vadd.f32 %v2321_v52, %v3106_v8 }
 0x5ad   : > { %v1411_v54 = vpop.f32.mrf.mxu0 }
 0x5ae   : > { %v3345_v55 = vadd.f32 %v3106_v8, %v1411_v54 }
 0x5b7   : > { %v2324_v47 = vpop.f32.mrf.mxu0 }
 0x5b8   : > { %v3348_v40 = vadd.f32 %v2324_v47, %v3106_v8 }
 0x5b9   : > { %v1424_v4 = vpop.f32.mrf.mxu0 }
 0x5ba   : > { %v3351_v38 = vadd.f32 %v3106_v8, %v1424_v4 }
 0x5bb   : > { %v2325_v44 = vpop.f32.mrf.mxu0 }
 0x5bc   : > { %v3354_v0 = vadd.f32 %v2325_v44, %v3106_v8 }
 0x5bd   : > { %v1427_v57 = vpop.f32.mrf.mxu0 }
 0x5be   : > { %v3357_v59 = vadd.f32 %v3106_v8, %v1427_v57 }
 0x5c7   : > { %v2328_v61 = vpop.f32.mrf.mxu0 }
 0x5c8   : > { %v3360_v63 = vadd.f32 %v2328_v61, %v3106_v8 }
 0x5c9   : > { %v1440_v3 = vpop.f32.mrf.mxu0 }
 0x5ca   : > { %v3363_v62 = vadd.f32 %v3106_v8, %v1440_v3  ;;  %1457 = sbr.rel (%p1921_p10) target bundleno = 1497 (0x5d9), region = 68 }
 0x5cb   : > { %v2329_v42 = vpop.f32.mrf.mxu0 }
 0x5cc   : > { %v3366_v49 = vadd.f32 %v2329_v42, %v3106_v8 }
 0x5cd   : > { %v1443_v5 = vpop.f32.mrf.mxu0 }
 0x5ce   : > { %v3369_v6 = vadd.f32 %v3106_v8, %v1443_v5 }
 0x5cf   : > { %v1458_v11 = vmax.f32 %v3327_v28, 0.0  ;;  %v1459_v50 = vmax.f32 %v3333_v32, 0.0  ;;  %v1460_v10 = vmax.f32 %v3324_v26, 0.0  ;;  %v1461_v51 = vmax.f32 %v3330_v30, 0.0 }
 0x5d0   : > { %v1462_v46 = vmax.f32 %v3339_v36, 0.0  ;;  %v1463_v1 = vmax.f32 %v3345_v55, 0.0  ;;  %v1464_v8 = vmax.f32 %v3336_v34, 0.0  ;;  %v1465_v48 = vmax.f32 %v3342_v53, 0.0 }
 0x5d1   : > { %v2055_v12 = vpack.c.bf16 %v1459_v50, %v1458_v11  ;;  %v2060_v56 = vpack.c.bf16 %v1461_v51, %v1460_v10  ;;  %v1466_v13 = vmax.f32 %v3351_v38, 0.0  ;;  %v1467_v37 = vmax.f32 %v3357_v59, 0.0 }
 0x5d2   : > { %v2065_v2 = vpack.c.bf16 %v1463_v1, %v1462_v46  ;;  %v2070_v60 = vpack.c.bf16 %v1465_v48, %v1464_v8  ;;  %v1468_v7 = vmax.f32 %v3348_v40, 0.0  ;;  %v1469_v14 = vmax.f32 %v3354_v0, 0.0 }
 0x5d3   : > { %2056 = vst [vmem:[%s1542_s9] sm:$0xff] %v2055_v12   ;;  %2099 = vst [vmem:[%s1542_s9 + $0x8] sm:$0xff] %v2060_v56   ;;  %v2075_v16 = vpack.c.bf16 %v1467_v37, %v1466_v13  ;;  %v1470_v41 = vmax.f32 %v3363_v62, 0.0  ;;  %v1471_v9 = vmax.f32 %v3369_v6, 0.0  ;;  %v1472_v43 = vmax.f32 %v3360_v63, 0.0 }
 0x5d4   : > { %2100 = vst [vmem:[%s1542_s9 + $0x10] sm:$0xff] %v2065_v2   ;;  %2101 = vst [vmem:[%s1542_s9 + $0x18] sm:$0xff] %v2070_v60   ;;  %v2080_v15 = vpack.c.bf16 %v1469_v14, %v1468_v7  ;;  %v1473_v45 = vmax.f32 %v3366_v49, 0.0 }
 0x5d5   : > { %2102 = vst [vmem:[%s1542_s9 + $0x20] sm:$0xff] %v2075_v16   ;;  %v2085_v39 = vpack.c.bf16 %v1471_v9, %v1470_v41 }
 0x5d6   : > { %2103 = vst [vmem:[%s1542_s9 + $0x28] sm:$0xff] %v2080_v15   ;;  %v2090_v58 = vpack.c.bf16 %v1473_v45, %v1472_v43 }
 0x5d7   : > { %2104 = vst [vmem:[%s1542_s9 + $0x30] sm:$0xff] %v2085_v39  }
 0x5d8   : > { %2105 = vst [vmem:[%s1542_s9 + $0x38] sm:$0xff] %v2090_v58  }
 0x5d9 PF: > { %1561 = sbr.rel (%p1939_p1) target bundleno = 1853 (0x73d), region = 72 }
 0x5de   : > { %v1562_v17 = vlaneseq }
 0x5e0   : > { %v1563_v18 = vand.u32 127, %v1562_v17 }
 0x5e2   : > { %vm1564_vm1 = vcmp.lt.s32.totalorder %v1563_v18, 7 }
 0x5e3   : > { %v1565_v19 = vsel %vm1564_vm1, %v3327_v28, -inf  ;;  %v1567_v20 = vsel %vm1564_vm1, %v3324_v26, -inf  ;;  %v1566_v21 = vsel %vm1564_vm1, %v3333_v32, -inf  ;;  %v1568_v22 = vsel %vm1564_vm1, %v3330_v30, -inf }
 0x5e4   : > { %1581 = vmax.xlane.f32.xlu0 %v1565_v19  ;;  %1585 = vmax.xlane.f32.xlu1 %v1567_v20  ;;  %v1569_v23 = vsel %vm1564_vm1, %v3339_v36, -inf  ;;  %v1570_v24 = vsel %vm1564_vm1, %v3345_v55, -inf  ;;  %v1571_v25 = vsel %vm1564_vm1, %v3336_v34, -inf  ;;  %v1572_v26 = vsel %vm1564_vm1, %v3342_v53, -inf }
 0x5e5   : > { %v1573_v27 = vsel %vm1564_vm1, %v3351_v38, -inf  ;;  %v1574_v28 = vsel %vm1564_vm1, %v3357_v59, -inf  ;;  %v1575_v29 = vsel %vm1564_vm1, %v3348_v40, -inf  ;;  %v1576_v30 = vsel %vm1564_vm1, %v3354_v0, -inf }
 0x5e6   : > { %v3418_v31 = vsel %vm1564_vm1, %v3363_v62, -inf  ;;  %v3422_v32 = vsel %vm1564_vm1, %v3369_v6, -inf  ;;  %v3428_v33 = vsel %vm1564_vm1, %v3360_v63, -inf  ;;  %v3432_v34 = vsel %vm1564_vm1, %v3366_v49, -inf }
 0x5e8   : > { %1583 = vmax.xlane.f32.xlu0 %v1566_v21  ;;  %1587 = vmax.xlane.f32.xlu1 %v1568_v22 }
 0x5ec   : > { %1589 = vmax.xlane.f32.xlu0 %v1569_v23  ;;  %1591 = vmax.xlane.f32.xlu1 %v1570_v24 }
 0x5f0   : > { %1593 = vmax.xlane.f32.xlu0 %v1571_v25  ;;  %1595 = vmax.xlane.f32.xlu1 %v1572_v26 }
 0x5f4   : > { %1597 = vmax.xlane.f32.xlu0 %v1573_v27  ;;  %1599 = vmax.xlane.f32.xlu1 %v1574_v28 }
 0x5f8   : > { %1601 = vmax.xlane.f32.xlu0 %v1575_v29  ;;  %1603 = vmax.xlane.f32.xlu1 %v1576_v30 }
 0x5fc   : > { %1605 = vmax.xlane.f32.xlu0 %v3418_v31  ;;  %1607 = vmax.xlane.f32.xlu1 %v3422_v32 }
 0x600   : > { %1609 = vmax.xlane.f32.xlu0 %v3428_v33  ;;  %1611 = vmax.xlane.f32.xlu1 %v3432_v34 }
 0x66d   : > { %v1582_v35 = vpop.xlane.xlu0 %1581  ;;  %v1586_v36 = vpop.xlane.xlu1 %1585 }
 0x66e   : > { %v3436_v52 = vsub.f32 %v1565_v19, %v1582_v35  ;;  %v3438_v53 = vsub.f32 %v1567_v20, %v1586_v36 }
 0x670   : > { %v1629_v54 = vmul.f32 1.442695, %v3436_v52  ;;  %v1633_v55 = vmul.f32 1.442695, %v3438_v53 }
 0x671   : > { %v1584_v47 = vpop.xlane.xlu0 %1583  ;;  %v1588_v40 = vpop.xlane.xlu1 %1587 }
 0x672   : > { %2544 = vpow2.f32 %v1629_v54  ;;  %v3442_v4 = vsub.f32 %v1566_v21, %v1584_v47  ;;  %v3444_v38 = vsub.f32 %v1568_v22, %v1588_v40 }
 0x673   : > { %2546 = vpow2.f32 %v1633_v55 }
 0x674   : > { %v1631_v44 = vmul.f32 1.442695, %v3442_v4  ;;  %v1635_v0 = vmul.f32 1.442695, %v3444_v38 }
 0x675   : > { %v1590_v57 = vpop.xlane.xlu0 %1589  ;;  %v1592_v59 = vpop.xlane.xlu1 %1591 }
 0x676   : > { %2548 = vpow2.f32 %v1631_v44  ;;  %v3448_v61 = vsub.f32 %v1569_v23, %v1590_v57  ;;  %v3450_v63 = vsub.f32 %v1570_v24, %v1592_v59 }
 0x677   : > { %2550 = vpow2.f32 %v1635_v0 }
 0x678   : > { %v1637_v3 = vmul.f32 1.442695, %v3448_v61  ;;  %v1639_v62 = vmul.f32 1.442695, %v3450_v63 }
 0x679   : > { %v1594_v42 = vpop.xlane.xlu0 %1593  ;;  %v1596_v49 = vpop.xlane.xlu1 %1595 }
 0x67a   : > { %2552 = vpow2.f32 %v1637_v3  ;;  %v3454_v5 = vsub.f32 %v1571_v25, %v1594_v42  ;;  %v3456_v6 = vsub.f32 %v1572_v26, %v1596_v49 }
 0x67b   : > { %2554 = vpow2.f32 %v1639_v62 }
 0x67c   : > { %v1641_v11 = vmul.f32 1.442695, %v3454_v5  ;;  %v1643_v50 = vmul.f32 1.442695, %v3456_v6 }
 0x67d   : > { %v1598_v10 = vpop.xlane.xlu0 %1597  ;;  %v1600_v51 = vpop.xlane.xlu1 %1599 }
 0x67e   : > { %2556 = vpow2.f32 %v1641_v11  ;;  %v3460_v46 = vsub.f32 %v1573_v27, %v1598_v10  ;;  %v3462_v1 = vsub.f32 %v1574_v28, %v1600_v51 }
 0x67f   : > { %v2545_v8 = vpop.eup %2544  ;;  %2558 = vpow2.f32 %v1643_v50 }
 0x680   : > { %v1645_v48 = vmul.f32 1.442695, %v3460_v46  ;;  %1661 = vadd.xlane.f32.xlu0 %v2545_v8  ;;  %v1647_v12 = vmul.f32 1.442695, %v3462_v1  ;;  %v2547_v56 = vpop.eup %2546 }
 0x681   : > { %v1602_v13 = vpop.xlane.xlu0 %1601  ;;  %v1604_v37 = vpop.xlane.xlu1 %1603 }
 0x682   : > { %2560 = vpow2.f32 %v1645_v48  ;;  %v3466_v2 = vsub.f32 %v1575_v29, %v1602_v13  ;;  %v3468_v60 = vsub.f32 %v1576_v30, %v1604_v37 }
 0x683   : > { %v2549_v7 = vpop.eup %2548  ;;  %2562 = vpow2.f32 %v1647_v12 }
 0x684   : > { %v1649_v14 = vmul.f32 1.442695, %v3466_v2  ;;  %1665 = vadd.xlane.f32.xlu0 %v2547_v56  ;;  %1663 = vadd.xlane.f32.xlu1 %v2549_v7  ;;  %v1651_v16 = vmul.f32 1.442695, %v3468_v60  ;;  %v2551_v41 = vpop.eup %2550 }
 0x685   : > { %v1606_v9 = vpop.xlane.xlu0 %1605  ;;  %v1608_v43 = vpop.xlane.xlu1 %1607 }
 0x686   : > { %2564 = vpow2.f32 %v1649_v14  ;;  %v3473_v15 = vsub.f32 %v3418_v31, %v1606_v9  ;;  %v3476_v45 = vsub.f32 %v3422_v32, %v1608_v43 }
 0x687   : > { %v2553_v39 = vpop.eup %2552  ;;  %2566 = vpow2.f32 %v1651_v16 }
 0x688   : > { %v1653_v58 = vmul.f32 1.442695, %v3473_v15  ;;  %1667 = vadd.xlane.f32.xlu1 %v2551_v41  ;;  %1669 = vadd.xlane.f32.xlu0 %v2553_v39  ;;  %v1655_v17 = vmul.f32 1.442695, %v3476_v45  ;;  %v2555_v18 = vpop.eup %2554 }
 0x689   : > { %v1610_v19 = vpop.xlane.xlu0 %1609  ;;  %v1612_v20 = vpop.xlane.xlu1 %1611 }
 0x68a   : > { %2568 = vpow2.f32 %v1653_v58  ;;  %v3481_v21 = vsub.f32 %v3428_v33, %v1610_v19  ;;  %v3484_v22 = vsub.f32 %v3432_v34, %v1612_v20 }
 0x68b   : > { %v2557_v23 = vpop.eup %2556  ;;  %2570 = vpow2.f32 %v1655_v17 }
 0x68c   : > { %v1657_v24 = vmul.f32 1.442695, %v3481_v21  ;;  %1671 = vadd.xlane.f32.xlu1 %v2555_v18  ;;  %1673 = vadd.xlane.f32.xlu0 %v2557_v23  ;;  %v1659_v25 = vmul.f32 1.442695, %v3484_v22  ;;  %v2559_v26 = vpop.eup %2558 }
 0x68e   : > { %2572 = vpow2.f32 %v1657_v24 }
 0x68f   : > { %v2561_v27 = vpop.eup %2560  ;;  %2574 = vpow2.f32 %v1659_v25 }
 0x690   : > { %1675 = vadd.xlane.f32.xlu1 %v2559_v26  ;;  %1677 = vadd.xlane.f32.xlu0 %v2561_v27  ;;  %v2563_v28 = vpop.eup %2562 }
 0x693   : > { %v2565_v29 = vpop.eup %2564 }
 0x694   : > { %1679 = vadd.xlane.f32.xlu1 %v2563_v28  ;;  %1681 = vadd.xlane.f32.xlu0 %v2565_v29  ;;  %v2567_v30 = vpop.eup %2566 }
 0x697   : > { %v2569_v31 = vpop.eup %2568 }
 0x698   : > { %1683 = vadd.xlane.f32.xlu1 %v2567_v30  ;;  %1685 = vadd.xlane.f32.xlu0 %v2569_v31  ;;  %v2571_v32 = vpop.eup %2570 }
 0x69b   : > { %v2573_v33 = vpop.eup %2572 }
 0x69c   : > { %1687 = vadd.xlane.f32.xlu1 %v2571_v32  ;;  %1689 = vadd.xlane.f32.xlu0 %v2573_v33  ;;  %v2575_v34 = vpop.eup %2574 }
 0x6a0   : > { %1691 = vadd.xlane.f32.xlu1 %v2575_v34 }
 0x709   : > { %v1662_v35 = vpop.xlane.xlu0 %1661 }
 0x70a   : > { %2576 = vlog2.f32 %v1662_v35 }
 0x70d   : > { %v1664_v36 = vpop.xlane.xlu1 %1663  ;;  %v1666_v54 = vpop.xlane.xlu0 %1665 }
 0x70e   : > { %2578 = vlog2.f32 %v1664_v36 }
 0x70f   : > { %2580 = vlog2.f32 %v1666_v54 }
 0x711   : > { %v1668_v55 = vpop.xlane.xlu1 %1667  ;;  %v1670_v47 = vpop.xlane.xlu0 %1669 }
 0x712   : > { %2582 = vlog2.f32 %v1668_v55 }
 0x713   : > { %2584 = vlog2.f32 %v1670_v47 }
 0x715   : > { %v1672_v40 = vpop.xlane.xlu1 %1671  ;;  %v1674_v44 = vpop.xlane.xlu0 %1673 }
 0x716   : > { %2586 = vlog2.f32 %v1672_v40 }
 0x717   : > { %v2577_v0 = vpop.eup %2576  ;;  %2588 = vlog2.f32 %v1674_v44 }
 0x718   : > { %v1694_v57 = vmul.f32 0.6931472, %v2577_v0 }
 0x719   : > { %v1676_v59 = vpop.xlane.xlu1 %1675  ;;  %v1678_v3 = vpop.xlane.xlu0 %1677 }
 0x71a   : > { %v1725_v62 = vsub.f32 %v3436_v52, %v1694_v57  ;;  %2590 = vlog2.f32 %v1676_v59 }
 0x71b   : > { %v2579_v42 = vpop.eup %2578  ;;  %2592 = vlog2.f32 %v1678_v3 }
 0x71c   : > { %v2581_v49 = vpop.eup %2580  ;;  %1742 = vst [vmem:[#allocation10 + $0x80] sm:$0xff] %v1725_v62  ;;  %v1696_v11 = vmul.f32 0.6931472, %v2579_v42 }
 0x71d   : > { %v1698_v50 = vmul.f32 0.6931472, %v2581_v49  ;;  %v1680_v10 = vpop.xlane.xlu1 %1679  ;;  %v1682_v51 = vpop.xlane.xlu0 %1681 }
 0x71e   : > { %v1726_v8 = vsub.f32 %v3442_v4, %v1696_v11  ;;  %2594 = vlog2.f32 %v1680_v10 }
 0x71f   : > { %v2583_v48 = vpop.eup %2582  ;;  %v1727_v12 = vsub.f32 %v3438_v53, %v1698_v50  ;;  %2596 = vlog2.f32 %v1682_v51 }
 0x720   : > { %v2585_v56 = vpop.eup %2584  ;;  %1743 = vst [vmem:[#allocation10 + $0x88] sm:$0xff] %v1726_v8  ;;  %v1700_v13 = vmul.f32 0.6931472, %v2583_v48 }
 0x721   : > { %1744 = vst [vmem:[#allocation10 + $0x90] sm:$0xff] %v1727_v12  ;;  %v1702_v52 = vmul.f32 0.6931472, %v2585_v56  ;;  %v1684_v37 = vpop.xlane.xlu1 %1683  ;;  %v1686_v7 = vpop.xlane.xlu0 %1685 }
 0x722   : > { %v1728_v14 = vsub.f32 %v3444_v38, %v1700_v13  ;;  %2598 = vlog2.f32 %v1684_v37 }
 0x723   : > { %v2587_v16 = vpop.eup %2586  ;;  %v1729_v41 = vsub.f32 %v3448_v61, %v1702_v52  ;;  %2600 = vlog2.f32 %v1686_v7 }
 0x724   : > { %v2589_v4 = vpop.eup %2588  ;;  %1745 = vst [vmem:[#allocation10 + $0x98] sm:$0xff] %v1728_v14  ;;  %v1704_v9 = vmul.f32 0.6931472, %v2587_v16 }
 0x725   : > { %1746 = vst [vmem:[#allocation10 + $0xa0] sm:$0xff] %v1729_v41  ;;  %v1706_v53 = vmul.f32 0.6931472, %v2589_v4  ;;  %v1688_v43 = vpop.xlane.xlu1 %1687  ;;  %v1690_v39 = vpop.xlane.xlu0 %1689 }
 0x726   : > { %v1730_v58 = vsub.f32 %v3450_v63, %v1704_v9  ;;  %2602 = vlog2.f32 %v1688_v43 }
 0x727   : > { %v2591_v17 = vpop.eup %2590  ;;  %v1731_v18 = vsub.f32 %v3454_v5, %v1706_v53  ;;  %2604 = vlog2.f32 %v1690_v39 }
 0x728   : > { %v2593_v38 = vpop.eup %2592  ;;  %1747 = vst [vmem:[#allocation10 + $0xa8] sm:$0xff] %v1730_v58  ;;  %v1708_v19 = vmul.f32 0.6931472, %v2591_v17 }
 0x729   : > { %1748 = vst [vmem:[#allocation10 + $0xb0] sm:$0xff] %v1731_v18  ;;  %v1710_v61 = vmul.f32 0.6931472, %v2593_v38  ;;  %v1692_v20 = vpop.xlane.xlu1 %1691 }
 0x72a   : > { %v1732_v23 = vsub.f32 %v3456_v6, %v1708_v19  ;;  %2606 = vlog2.f32 %v1692_v20 }
 0x72b   : > { %v2595_v24 = vpop.eup %2594  ;;  %v1733_v25 = vsub.f32 %v3460_v46, %v1710_v61 }
 0x72c   : > { %v2597_v26 = vpop.eup %2596  ;;  %1749 = vst [vmem:[#allocation10 + $0xb8] sm:$0xff] %v1732_v23  ;;  %v1712_v63 = vmul.f32 0.6931472, %v2595_v24 }
 0x72d   : > { %1750 = vst [vmem:[#allocation10 + $0xc0] sm:$0xff] %v1733_v25  ;;  %v1714_v27 = vmul.f32 0.6931472, %v2597_v26 }
 0x72e   : > { %v1734_v5 = vsub.f32 %v3462_v1, %v1712_v63 }
 0x72f   : > { %v2599_v28 = vpop.eup %2598  ;;  %v1735_v29 = vsub.f32 %v3466_v2, %v1714_v27 }
 0x730   : > { %v2601_v30 = vpop.eup %2600  ;;  %1751 = vst [vmem:[#allocation10 + $0xc8] sm:$0xff] %v1734_v5  ;;  %v1716_v31 = vmul.f32 0.6931472, %v2599_v28 }
 0x731   : > { %1752 = vst [vmem:[#allocation10 + $0xd0] sm:$0xff] %v1735_v29  ;;  %v1718_v32 = vmul.f32 0.6931472, %v2601_v30 }
 0x732   : > { %v1736_v6 = vsub.f32 %v3468_v60, %v1716_v31 }
 0x733   : > { %v2603_v33 = vpop.eup %2602  ;;  %v1737_v46 = vsub.f32 %v3473_v15, %v1718_v32 }
 0x734   : > { %v2605_v34 = vpop.eup %2604  ;;  %1753 = vst [vmem:[#allocation10 + $0xd8] sm:$0xff] %v1736_v6  ;;  %v1720_v35 = vmul.f32 0.6931472, %v2603_v33 }
 0x735   : > { %1754 = vst [vmem:[#allocation10 + $0xe0] sm:$0xff] %v1737_v46  ;;  %v1722_v36 = vmul.f32 0.6931472, %v2605_v34 }
 0x736   : > { %v1738_v1 = vsub.f32 %v3476_v45, %v1720_v35 }
 0x737   : > { %v2607_v54 = vpop.eup %2606  ;;  %v1739_v2 = vsub.f32 %v3481_v21, %v1722_v36 }
 0x738   : > { %1755 = vst [vmem:[#allocation10 + $0xe8] sm:$0xff] %v1738_v1  ;;  %v1724_v55 = vmul.f32 0.6931472, %v2607_v54 }
 0x739   : > { %1756 = vst [vmem:[#allocation10 + $0xf0] sm:$0xff] %v1739_v2 }
 0x73a   : > { %v1740_v47 = vsub.f32 %v3484_v22, %v1724_v55 }
 0x73c   : > { %1757 = vst [vmem:[#allocation10 + $0xf8] sm:$0xff] %v1740_v47 }
 0x73d PF: > { %s2796_s26 = smov [#allocation10]  }
 0x73e   : > { %s1764_s21 = sshll.u32 %s2796_s26, 4  ;;  %s1765_s21 = int_to_ptr.vmem [resolvable:$true] %s1764_s21 }
 0x73f   : > { %s2716_s24 = scalar_lea.vmem %s1765_s21, 4096  ;;  %p2723_p2 = scmp.lt.s32.totalorder %s1765_s21, %s1765_s21 }
 0x740   : > { %p2717_p11 = scmp.ne.s32.totalorder %s1765_s21, %s2716_s24  ;;  %p2724_p12 = scmp.lt.s32.totalorder %s2716_s24, %s2716_s24 }
 0x742   : > { %p2718_p4 = pnand %p2717_p11, %p1921_p10  ;;  %p2725_p5 = por %p2724_p12, %p2723_p2 }
 0x744   : > { %p2719_p9 = pneg %p2718_p4 }
 0x746   : > { %p2726_p13 = pnand %p2725_p5, %p2719_p9 }
 0x748   : > { %2729 = shalt.err (!%p2726_p13)
}
 0x749   : > { %s2797_s25 = smov 128   ;;  %s2798_s12 = smov 8  }
 0x74a   : > { %2343 = dma.vmem_to_hbm [thread:$0]  (%p1921_p10), %s1765_s21, 4096, %s3532_s4, [#allocation5], %s2797_s25, %s2797_s25, %s2798_s12  }
 0x74b   : > { %2769 = dma.done.wait (%p1921_p10), [#allocation5], 4096  }
 0x74c   : > { %2771 = vsyncadd (%p1921_p10), [#allocation5], 4294963200 }
 0x74d PF: > { %p14_p3 = scmp.ge.s32.totalorder %s2846_s20, 8   ;;  %s3550_s15 = smov %s2778_s16 }
 0x74e   : > { %s3551_s16 = smov %s2782_s17  ;;  %s3552_s17 = smov %s2856_s23 }
 0x74f   : > { %s3553_s18 = smov %s2846_s20  ;;  %16 = sbr.rel (!%p14_p3) target bundleno = 4 (0x4), region = 117 }
 0x754   :  { %1780 = vsyncpa [#allocation4], 1 }
 0x755   :  { %1782 = vsyncpa [#allocation4 + $0x1], 1 }
 0x756   :  { %1783 = vsyncpa [#allocation7], 1 }
 0x757   :  { %1784 = vsyncpa [#allocation5], 1 }
 0x758   :  { %1786 = vsyncpa [#allocation5 + $0x1], 1 }

</bundles_post_ra>
